<compile_context>
chip_gen: v6e
topology: v6e:2x2x1
jax: 0.10.0
libtpu: 0.0.40
codegen_flags: <defaults>
</compile_context>

<pallas_src>
import functools
import jax
import jax.numpy as jnp
from jax.experimental import pallas as pl
from jax.experimental.pallas import tpu as pltpu


def _round_up(x, m):
    return (x + m - 1) // m * m


# --------------------------------------------------------------------------
# generic row-tiled linear (projections of MSDeformAttn)
# --------------------------------------------------------------------------
def _linear_kernel(x_ref, w_ref, b_ref, o_ref, *, act):
    y = jnp.dot(x_ref[...], w_ref[...], preferred_element_type=jnp.float32) + b_ref[...]
    if act == "relu":
        y = jnp.maximum(y, 0.0)
    o_ref[...] = y.astype(o_ref.dtype)


def linear(x, w, b, act=None, row_tile=512):
    R, K = x.shape
    Nout = w.shape[1]
    TM = min(_round_up(R, 8), row_tile)
    return pl.pallas_call(
        functools.partial(_linear_kernel, act=act),
        out_shape=jax.ShapeDtypeStruct((R, Nout), jnp.float32),
        grid=(pl.cdiv(R, TM),),
        in_specs=[pl.BlockSpec((TM, K), lambda i: (i, 0)),
                  pl.BlockSpec((K, Nout), lambda i: (0, 0)),
                  pl.BlockSpec((1, Nout), lambda i: (0, 0))],
        out_specs=pl.BlockSpec((TM, Nout), lambda i: (i, 0)),
        compiler_params=pltpu.CompilerParams(dimension_semantics=("parallel",)),
    )(x, w, b.reshape(1, Nout))


# --------------------------------------------------------------------------
# fused multi-head attention + residual + LayerNorm (one batch element / step)
# --------------------------------------------------------------------------
def _mha_kernel(q_ref, k_ref, v_ref, res_ref, mask_ref,
                wq_ref, bq_ref, wk_ref, bk_ref, wv_ref, bv_ref,
                wo_ref, bo_ref, g_ref, b_ref, o_ref, *, n_heads):
    C = q_ref.shape[-1]
    D = C // n_heads
    scale = 1.0 / float(D) ** 0.5

    q = jnp.dot(q_ref[0], wq_ref[...], preferred_element_type=jnp.float32) + bq_ref[...]
    k = jnp.dot(k_ref[0], wk_ref[...], preferred_element_type=jnp.float32) + bk_ref[...]
    v = jnp.dot(v_ref[0], wv_ref[...], preferred_element_type=jnp.float32) + bv_ref[...]
    neg = jnp.where(mask_ref[0] > 0.5, -1e30, 0.0)            # (1, Lk)

    heads = []
    for h in range(n_heads):
        qh = q[:, h * D:(h + 1) * D] * scale
        kh = k[:, h * D:(h + 1) * D]
        vh = v[:, h * D:(h + 1) * D]
        s = jax.lax.dot_general(qh, kh, (((1,), (1,)), ((), ())),
                                preferred_element_type=jnp.float32) + neg
        m = jnp.max(s, axis=-1, keepdims=True)
        e = jnp.exp(s - m)
        p_attn = e * pl.reciprocal(jnp.sum(e, axis=-1, keepdims=True), approx=True)
        heads.append(jnp.dot(p_attn, vh, preferred_element_type=jnp.float32))
    att = jnp.concatenate(heads, axis=-1)                     # (Lq, C) lane-dense

    out = jnp.dot(att, wo_ref[...], preferred_element_type=jnp.float32) + bo_ref[...]
    x = res_ref[0] + out
    mu = jnp.mean(x, axis=-1, keepdims=True)
    var = jnp.mean(jnp.square(x - mu), axis=-1, keepdims=True)
    o_ref[0] = ((x - mu) * jax.lax.rsqrt(var + 1e-5) * g_ref[...] + b_ref[...]
                ).astype(o_ref.dtype)


def mha_residual_ln(q_in, k_in, v_in, res, mask, w, n_heads):
    N, Lq, C = q_in.shape
    Lk = k_in.shape[1]
    batch3 = lambda a, b: pl.BlockSpec((1, a, b), lambda i: (i, 0, 0))
    full = lambda a, b: pl.BlockSpec((a, b), lambda i: (0, 0))
    return pl.pallas_call(
        functools.partial(_mha_kernel, n_heads=n_heads),
        out_shape=jax.ShapeDtypeStruct((N, Lq, C), jnp.float32),
        grid=(N,),
        in_specs=[batch3(Lq, C), batch3(Lk, C), batch3(Lk, C), batch3(Lq, C),
                  batch3(1, Lk),
                  full(C, C), full(1, C),
                  full(C, C), full(1, C),
                  full(C, C), full(1, C),
                  full(C, C), full(1, C),
                  full(1, C), full(1, C)],
        out_specs=batch3(Lq, C),
        compiler_params=pltpu.CompilerParams(dimension_semantics=("parallel",)),
    )(q_in, k_in, v_in, res, mask,
      w["Wq"], w["bq"].reshape(1, C), w["Wk"], w["bk"].reshape(1, C),
      w["Wv"], w["bv"].reshape(1, C), w["Wo"], w["bo"].reshape(1, C),
      w["g"].reshape(1, C), w["b"].reshape(1, C))


# --------------------------------------------------------------------------
# multi-scale deformable attention core (all heads of one batch element / step)
# --------------------------------------------------------------------------
def _deform_kernel(locx_ref, locy_ref, logit_ref, val_ref, o_ref,
                   *, shapes, starts, n_heads, n_points):
    Q = locx_ref.shape[1]
    C = val_ref.shape[-1]
    M, P, L = n_heads, n_points, len(shapes)
    D = C // M
    LP = L * P

    locx = locx_ref[0]
    locy = locy_ref[0]
    logits = logit_ref[0]
    value = val_ref[0]

    heads = []
    for h in range(M):
        # softmax over levels*points for this head
        lg = logits[:, h * LP:(h + 1) * LP]
        m = jnp.max(lg, axis=-1, keepdims=True)
        e = jnp.exp(lg - m)
        attn = e * pl.reciprocal(jnp.sum(e, axis=-1, keepdims=True), approx=True)

        out_h = jnp.zeros((Q, D), jnp.float32)
        for l, (H, W) in enumerate(shapes):
            s0 = starts[l]
            S_l = H * W
            v_lh = value[s0:s0 + S_l, h * D:(h + 1) * D]      # (S_l, D) static slice
            iota = jax.lax.broadcasted_iota(jnp.int32, (Q, S_l), 1)
            A = jnp.zeros((Q, S_l), jnp.float32)
            for pt in range(P):                               # P-loop: no (Q,P,S_l) temp
                col = h * LP + l * P + pt
                x = locx[:, col:col + 1] * W - 0.5            # (Q, 1)
                y = locy[:, col:col + 1] * H - 0.5
                aw = attn[:, l * P + pt:l * P + pt + 1]       # (Q, 1)
                x0f = jnp.floor(x)
                y0f = jnp.floor(y)
                dx = x - x0f
                dy = y - y0f
                x0 = x0f.astype(jnp.int32)
                y0 = y0f.astype(jnp.int32)
                for cx, cy, w in ((x0, y0, (1.0 - dx) * (1.0 - dy)),
                                  (x0 + 1, y0, dx * (1.0 - dy)),
                                  (x0, y0 + 1, (1.0 - dx) * dy),
                                  (x0 + 1, y0 + 1, dx * dy)):
                    valid = (cx >= 0) & (cx < W) & (cy >= 0) & (cy < H)
                    wgt = jnp.where(valid, w * aw, 0.0)       # zeros-padding grid_sample
                    idx = cy * W + cx                         # (Q, 1)
                    A = A + jnp.where(iota == idx, wgt, 0.0)
            out_h = out_h + jnp.dot(A, v_lh, preferred_element_type=jnp.float32)
        heads.append(out_h)
    o_ref[0] = jnp.concatenate(heads, axis=-1).astype(o_ref.dtype)   # (Q, C) lane-dense


def deform_core(locx, locy, logits, value, shapes, starts, n_heads, n_points):
    N, Q, MLP = locx.shape
    S, C = value.shape[1], value.shape[2]
    kernel = functools.partial(_deform_kernel, shapes=tuple(shapes),
                               starts=tuple(starts), n_heads=n_heads,
                               n_points=n_points)
    b3 = lambda a, b: pl.BlockSpec((1, a, b), lambda i: (i, 0, 0))
    return pl.pallas_call(
        kernel,
        out_shape=jax.ShapeDtypeStruct((N, Q, C), jnp.float32),
        grid=(N,),
        in_specs=[b3(Q, MLP), b3(Q, MLP), b3(Q, MLP), b3(S, C)],
        out_specs=b3(Q, C),
        compiler_params=pltpu.CompilerParams(dimension_semantics=("parallel",)),
    )(locx, locy, logits, value)


# --------------------------------------------------------------------------
# fused: output_proj + residual + norm1 + FFN(relu) + residual + norm3
# --------------------------------------------------------------------------
def _post_kernel(att_ref, res_ref, wo_ref, bo_ref, g1_ref, b1_ref,
                 w1_ref, bb1_ref, w2_ref, bb2_ref, g3_ref, b3_ref, o_ref):
    def ln(x, g, b):
        mu = jnp.mean(x, axis=-1, keepdims=True)
        var = jnp.mean(jnp.square(x - mu), axis=-1, keepdims=True)
        return (x - mu) * jax.lax.rsqrt(var + 1e-5) * g + b

    att = jnp.dot(att_ref[...], wo_ref[...], preferred_element_type=jnp.float32) + bo_ref[...]
    x = ln(res_ref[...] + att, g1_ref[...], b1_ref[...])
    h = jnp.maximum(
        jnp.dot(x, w1_ref[...], preferred_element_type=jnp.float32) + bb1_ref[...], 0.0)
    y = x + jnp.dot(h, w2_ref[...], preferred_element_type=jnp.float32) + bb2_ref[...]
    o_ref[...] = ln(y, g3_ref[...], b3_ref[...]).astype(o_ref.dtype)


def post_block(att2d, res2d, p, row_tile=256):   # 256 keeps the (TM,F) hidden v7x-safe
    R, C = att2d.shape
    F = p["W1"].shape[1]
    TM = min(_round_up(R, 8), row_tile)
    act = lambda: pl.BlockSpec((TM, C), lambda i: (i, 0))
    full = lambda a, b: pl.BlockSpec((a, b), lambda i: (0, 0))
    return pl.pallas_call(
        _post_kernel,
        out_shape=jax.ShapeDtypeStruct((R, C), jnp.float32),
        grid=(pl.cdiv(R, TM),),
        in_specs=[act(), act(),
                  full(C, C), full(1, C),
                  full(1, C), full(1, C),
                  full(C, F), full(1, F),
                  full(F, C), full(1, C),
                  full(1, C), full(1, C)],
        out_specs=act(),
        compiler_params=pltpu.CompilerParams(dimension_semantics=("parallel",)),
    )(att2d, res2d,
      p["W_o"], p["b_o"].reshape(1, C),
      p["g1"].reshape(1, C), p["be1"].reshape(1, C),
      p["W1"], p["b1f"].reshape(1, F),
      p["W2"], p["b2c"].reshape(1, C),
      p["g3"].reshape(1, C), p["be3"].reshape(1, C))


# --------------------------------------------------------------------------
# full DepthAwareDecoderLayer forward
# --------------------------------------------------------------------------
def depth_aware_decoder_layer(p, tgt, query_pos, reference_points, src,
                              src_spatial_shapes, level_start_index,
                              src_padding_mask, depth_pos_embed, mask_depth,
                              query_sine_embed, *, n_heads, n_points):
    N, Q, C = tgt.shape
    M, P = n_heads, n_points
    L = len(src_spatial_shapes)

    # ---- 1. depth cross-attention + residual + norm_depth ----
    dpe = jnp.transpose(depth_pos_embed, (1, 0, 2))            # (N, S_d, C)
    S_d = dpe.shape[1]
    if mask_depth is None:
        mask_d = jnp.zeros((N, 1, S_d), jnp.float32)
    else:
        mask_d = mask_depth.astype(jnp.float32).reshape(N, 1, S_d)
    tgt = mha_residual_ln(tgt + query_pos, dpe, dpe, tgt, mask_d, p["dep"], M)

    # ---- 2. self-attention + residual + norm2 ----
    qk = tgt + query_pos
    zero_mask = jnp.zeros((N, 1, Q), jnp.float32)
    tgt = mha_residual_ln(qk, qk, tgt, tgt, zero_mask, p["self"], M)

    # ---- 3. multi-scale deformable cross-attention ----
    query = (tgt + query_sine_embed).reshape(N * Q, C)
    # fused sampling-offset | attention-weight projection (single matmul)
    W_soaw = jnp.concatenate([p["W_so"], p["W_aw"]], axis=1)
    b_soaw = jnp.concatenate([p["b_so"], p["b_aw"]])
    so_aw = linear(query, W_soaw, b_soaw)                      # (N*Q, M*L*P*3)
    n_off = M * L * P * 2
    off = so_aw[:, :n_off].reshape(N, Q, M, L, P, 2)
    logits = so_aw[:, n_off:].reshape(N, Q, M * L * P)

    value = linear(src.reshape(-1, C), p["W_v"], p["b_v"]).reshape(N, -1, C)
    if src_padding_mask is not None:
        value = jnp.where(src_padding_mask[:, :, None], 0.0, value)

    normalizer = jnp.array([[w, h] for (h, w) in src_spatial_shapes], jnp.float32)
    loc = reference_points[:, :, None, :, None, :] + \
        off / normalizer[None, None, None, :, None, :]
    locx = loc[..., 0].reshape(N, Q, M * L * P)
    locy = loc[..., 1].reshape(N, Q, M * L * P)

    att_raw = deform_core(locx, locy, logits, value,
                          src_spatial_shapes, level_start_index, M, P)  # (N, Q, C)

    # ---- 4. output_proj + residual + norm1 + FFN + residual + norm3 (fused) ----
    out = post_block(att_raw.reshape(N * Q, C), tgt.reshape(N * Q, C), p)
    return out.reshape(N, Q, C)


# --------------------------------------------------------------------------
# pure-JAX reference (PyTorch semantics, eval mode)
# --------------------------------------------------------------------------
def reference_layer(p, tgt, query_pos, reference_points, src, shapes, starts,
                    src_padding_mask, depth_pos_embed, mask_depth,
                    query_sine_embed, M, P):
    def ln(x, g, b):
        mu = x.mean(-1, keepdims=True)
        var = ((x - mu) ** 2).mean(-1, keepdims=True)
        return (x - mu) / jnp.sqrt(var + 1e-5) * g + b

    def mha(q_in, k_in, v_in, mask, w):
        N, Lq, C = q_in.shape
        D = C // M
        q = (q_in @ w["Wq"] + w["bq"]).reshape(N, Lq, M, D).transpose(0, 2, 1, 3)
        k = (k_in @ w["Wk"] + w["bk"]).reshape(N, -1, M, D).transpose(0, 2, 1, 3)
        v = (v_in @ w["Wv"] + w["bv"]).reshape(N, -1, M, D).transpose(0, 2, 1, 3)
        s = jnp.einsum('nhqd,nhkd->nhqk', q * (D ** -0.5), k)
        if mask is not None:
            s = s + jnp.where(mask[:, None, None, :], -1e30, 0.0)
        pa = jax.nn.softmax(s, -1)
        o = jnp.einsum('nhqk,nhkd->nhqd', pa, v).transpose(0, 2, 1, 3).reshape(N, Lq, C)
        return o @ w["Wo"] + w["bo"]

    N, Q, C = tgt.shape
    L = len(shapes)
    D = C // M

    dpe = jnp.transpose(depth_pos_embed, (1, 0, 2))
    t2 = mha(tgt + query_pos, dpe, dpe, mask_depth, p["dep"])
    tgt = ln(tgt + t2, p["dep"]["g"], p["dep"]["b"])

    qk = tgt + query_pos
    t2 = mha(qk, qk, tgt, None, p["self"])
    tgt = ln(tgt + t2, p["self"]["g"], p["self"]["b"])

    q2 = (tgt + query_sine_embed).reshape(N * Q, C)
    off = (q2 @ p["W_so"] + p["b_so"]).reshape(N, Q, M, L, P, 2)
    logits = (q2 @ p["W_aw"] + p["b_aw"]).reshape(N, Q, M, L * P)
    val = (src.reshape(-1, C) @ p["W_v"] + p["b_v"]).reshape(N, -1, M, D)
    if src_padding_mask is not None:
        val = jnp.where(src_padding_mask[:, :, None, None], 0.0, val)
    norm = jnp.array([[w_, h_] for (h_, w_) in shapes], jnp.float32)
    loc = reference_points[:, :, None, :, None, :] + \
        off / norm[None, None, None, :, None, :]
    locs = loc.transpose(0, 2, 1, 3, 4, 5).reshape(N * M, Q, L * P, 2)
    lg = logits.transpose(0, 2, 1, 3).reshape(N * M, Q, L * P)
    v = val.transpose(0, 2, 1, 3).reshape(N * M, -1, D)
    attnw = jax.nn.softmax(lg, -1)
    out = jnp.zeros((N * M, Q, D), jnp.float32)
    for l, (H, W) in enumerate(shapes):
        s0 = starts[l]
        v_l = v[:, s0:s0 + H * W, :]
        x = locs[:, :, l * P:(l + 1) * P, 0] * W - 0.5
        y = locs[:, :, l * P:(l + 1) * P, 1] * H - 0.5
        aw = attnw[:, :, l * P:(l + 1) * P]
        x0f, y0f = jnp.floor(x), jnp.floor(y)
        dx, dy = x - x0f, y - y0f
        x0, y0 = x0f.astype(jnp.int32), y0f.astype(jnp.int32)
        for cx, cy, w_ in ((x0, y0, (1 - dx) * (1 - dy)), (x0 + 1, y0, dx * (1 - dy)),
                           (x0, y0 + 1, (1 - dx) * dy), (x0 + 1, y0 + 1, dx * dy)):
            valid = ((cx >= 0) & (cx < W) & (cy >= 0) & (cy < H)).astype(jnp.float32)
            idx = jnp.clip(cy, 0, H - 1) * W + jnp.clip(cx, 0, W - 1)
            g = jax.vmap(lambda vv, ii: vv[ii])(v_l, idx)      # (NM, Q, P, D)
            out = out + jnp.sum(g * (w_ * aw * valid)[..., None], axis=2)
    att = out.reshape(N, M, Q, D).transpose(0, 2, 1, 3).reshape(N * Q, C)
    att = att @ p["W_o"] + p["b_o"]
    x = ln(tgt.reshape(N * Q, C) + att, p["g1"], p["be1"])
    h = jnp.maximum(x @ p["W1"] + p["b1f"], 0.0)
    x = ln(x + h @ p["W2"] + p["b2c"], p["g3"], p["be3"])
    return x.reshape(N, Q, C)


# ---------------------------------- main --------------------------------------
if __name__ == "__main__":
    # small config consistent with the module: d_model=32, d_ffn=64, 4 heads,
    # 2 levels (4x4 and 2x2 feature maps), 2 points, 16 queries, 24 depth tokens.
    N, C, F = 2, 32, 64
    M, L, P = 4, 2, 2
    Q = 16
    S_d = 24
    spatial_shapes = [(4, 4), (2, 2)]
    level_start = [0, 16]
    S = sum(h * w for h, w in spatial_shapes)   # 20

    keys = iter(jax.random.split(jax.random.PRNGKey(0), 64))

    def rnd(*shape, scale=0.1):
        return scale * jax.random.normal(next(keys), shape, jnp.float32)

    def mha_params():
        return {"Wq": rnd(C, C), "bq": rnd(C), "Wk": rnd(C, C), "bk": rnd(C),
                "Wv": rnd(C, C), "bv": rnd(C), "Wo": rnd(C, C), "bo": rnd(C),
                "g": 1.0 + rnd(C), "b": rnd(C)}

    params = {
        "dep": mha_params(),                    # cross_attn_depth + norm_depth
        "self": mha_params(),                   # self_attn + norm2
        "W_so": rnd(C, M * L * P * 2), "b_so": rnd(M * L * P * 2),
        "W_aw": rnd(C, M * L * P), "b_aw": rnd(M * L * P),
        "W_v": rnd(C, C), "b_v": rnd(C),
        "W_o": rnd(C, C), "b_o": rnd(C),
        "g1": 1.0 + rnd(C), "be1": rnd(C),      # norm1
        "W1": rnd(C, F), "b1f": rnd(F),
        "W2": rnd(F, C), "b2c": rnd(C),
        "g3": 1.0 + rnd(C), "be3": rnd(C),      # norm3
    }

    tgt = rnd(N, Q, C, scale=1.0)
    query_pos = rnd(N, Q, C, scale=1.0)
    query_sine_embed = rnd(N, Q, C, scale=1.0)
    src = rnd(N, S, C, scale=1.0)
    depth_pos_embed = rnd(S_d, N, C, scale=1.0)          # (S_depth, batch, C)
    reference_points = jax.random.uniform(next(keys), (N, Q, L, 2), jnp.float32,
                                          minval=0.05, maxval=0.95)
    # mask out the last 4 depth tokens of batch element 1
    mask_depth = (jnp.arange(S_d)[None, :] >= S_d - 4) & (jnp.arange(N)[:, None] == 1)

    out = depth_aware_decoder_layer(
        params, tgt, query_pos, reference_points, src,
        spatial_shapes, level_start, None, depth_pos_embed, mask_depth,
        query_sine_embed, n_heads=M, n_points=P)
    out = jax.block_until_ready(out)

    ref = reference_layer(params, tgt, query_pos, reference_points, src,
                          spatial_shapes, level_start, None, depth_pos_embed,
                          mask_depth, query_sine_embed, M, P)

    assert out.shape == (N, Q, C)
    err = float(jnp.max(jnp.abs(out - ref)))
    assert err < 2e-3, err   # approx-reciprocal softmax vs exact reference
    print("KERNEL_OK")
</pallas_src>

<mosaic_0001>
module attributes {stable_mosaic.version = 11 : i64} {
  func.func @_mha_kernel(%arg0: i32, %arg1: memref<1x16x32xf32, #tpu.memory_space<vmem>>, %arg2: memref<1x24x32xf32, #tpu.memory_space<vmem>>, %arg3: memref<1x24x32xf32, #tpu.memory_space<vmem>>, %arg4: memref<1x16x32xf32, #tpu.memory_space<vmem>>, %arg5: memref<1x1x24xf32, #tpu.memory_space<vmem>>, %arg6: memref<32x32xf32, #tpu.memory_space<vmem>>, %arg7: memref<1x32xf32, #tpu.memory_space<vmem>>, %arg8: memref<32x32xf32, #tpu.memory_space<vmem>>, %arg9: memref<1x32xf32, #tpu.memory_space<vmem>>, %arg10: memref<32x32xf32, #tpu.memory_space<vmem>>, %arg11: memref<1x32xf32, #tpu.memory_space<vmem>>, %arg12: memref<32x32xf32, #tpu.memory_space<vmem>>, %arg13: memref<1x32xf32, #tpu.memory_space<vmem>>, %arg14: memref<1x32xf32, #tpu.memory_space<vmem>>, %arg15: memref<1x32xf32, #tpu.memory_space<vmem>>, %arg16: memref<1x16x32xf32, #tpu.memory_space<vmem>>) attributes {dimension_semantics = [#tpu.dimension_semantics<parallel>], iteration_bounds = array<i64: 2>, scalar_prefetch = 0 : i64, scratch_operands = 0 : i64, tpu.core_type = #tpu.core_type<tc>, window_params = [{transform_indices = @transform_0, window_bounds = array<i64: 1, 16, 32>}, {transform_indices = @transform_1, window_bounds = array<i64: 1, 24, 32>}, {transform_indices = @transform_2, window_bounds = array<i64: 1, 24, 32>}, {transform_indices = @transform_3, window_bounds = array<i64: 1, 16, 32>}, {transform_indices = @transform_4, window_bounds = array<i64: 1, 1, 24>}, {pipeline_mode = #tpu.pipeline_mode<synchronous>, transform_indices = @transform_5, window_bounds = array<i64: 32, 32>}, {pipeline_mode = #tpu.pipeline_mode<synchronous>, transform_indices = @transform_6, window_bounds = array<i64: 1, 32>}, {pipeline_mode = #tpu.pipeline_mode<synchronous>, transform_indices = @transform_7, window_bounds = array<i64: 32, 32>}, {pipeline_mode = #tpu.pipeline_mode<synchronous>, transform_indices = @transform_8, window_bounds = array<i64: 1, 32>}, {pipeline_mode = #tpu.pipeline_mode<synchronous>, transform_indices = @transform_9, window_bounds = array<i64: 32, 32>}, {pipeline_mode = #tpu.pipeline_mode<synchronous>, transform_indices = @transform_10, window_bounds = array<i64: 1, 32>}, {pipeline_mode = #tpu.pipeline_mode<synchronous>, transform_indices = @transform_11, window_bounds = array<i64: 32, 32>}, {pipeline_mode = #tpu.pipeline_mode<synchronous>, transform_indices = @transform_12, window_bounds = array<i64: 1, 32>}, {pipeline_mode = #tpu.pipeline_mode<synchronous>, transform_indices = @transform_13, window_bounds = array<i64: 1, 32>}, {pipeline_mode = #tpu.pipeline_mode<synchronous>, transform_indices = @transform_14, window_bounds = array<i64: 1, 32>}, {transform_indices = @transform_15, window_bounds = array<i64: 1, 16, 32>}]} {
    %c0 = arith.constant 0 : index
    %c0_0 = arith.constant 0 : index
    %c0_1 = arith.constant 0 : index
    %0 = vector.load %arg1[%c0, %c0_0, %c0_1] : memref<1x16x32xf32, #tpu.memory_space<vmem>>, vector<1x16x32xf32>
    %1 = vector.shape_cast %0 : vector<1x16x32xf32> to vector<16x32xf32>
    %c0_2 = arith.constant 0 : index
    %c0_3 = arith.constant 0 : index
    %2 = vector.load %arg6[%c0_2, %c0_3] : memref<32x32xf32, #tpu.memory_space<vmem>>, vector<32x32xf32>
    %cst = arith.constant dense<0.000000e+00> : vector<16x32xf32>
    %3 = tpu.matmul %1, %2, %cst {dimension_numbers = #tpu.dot_dimension_numbers<[1], [0], [0], [1], [0, 0, 1, 1], [], []>} : vector<16x32xf32>, vector<32x32xf32>, vector<16x32xf32> -> vector<16x32xf32>
    %c0_4 = arith.constant 0 : index
    %c0_5 = arith.constant 0 : index
    %4 = vector.load %arg7[%c0_4, %c0_5] : memref<1x32xf32, #tpu.memory_space<vmem>>, vector<1x32xf32>
    %5 = vector.broadcast %4 : vector<1x32xf32> to vector<16x32xf32>
    %6 = arith.addf %3, %5 : vector<16x32xf32>
    %c0_6 = arith.constant 0 : index
    %c0_7 = arith.constant 0 : index
    %c0_8 = arith.constant 0 : index
    %7 = vector.load %arg2[%c0_6, %c0_7, %c0_8] : memref<1x24x32xf32, #tpu.memory_space<vmem>>, vector<1x24x32xf32>
    %8 = vector.shape_cast %7 : vector<1x24x32xf32> to vector<24x32xf32>
    %c0_9 = arith.constant 0 : index
    %c0_10 = arith.constant 0 : index
    %9 = vector.load %arg8[%c0_9, %c0_10] : memref<32x32xf32, #tpu.memory_space<vmem>>, vector<32x32xf32>
    %cst_11 = arith.constant dense<0.000000e+00> : vector<24x32xf32>
    %10 = tpu.matmul %8, %9, %cst_11 {dimension_numbers = #tpu.dot_dimension_numbers<[1], [0], [0], [1], [0, 0, 1, 1], [], []>} : vector<24x32xf32>, vector<32x32xf32>, vector<24x32xf32> -> vector<24x32xf32>
    %c0_12 = arith.constant 0 : index
    %c0_13 = arith.constant 0 : index
    %11 = vector.load %arg9[%c0_12, %c0_13] : memref<1x32xf32, #tpu.memory_space<vmem>>, vector<1x32xf32>
    %12 = vector.broadcast %11 : vector<1x32xf32> to vector<24x32xf32>
    %13 = arith.addf %10, %12 : vector<24x32xf32>
    %c0_14 = arith.constant 0 : index
    %c0_15 = arith.constant 0 : index
    %c0_16 = arith.constant 0 : index
    %14 = vector.load %arg3[%c0_14, %c0_15, %c0_16] : memref<1x24x32xf32, #tpu.memory_space<vmem>>, vector<1x24x32xf32>
    %15 = vector.shape_cast %14 : vector<1x24x32xf32> to vector<24x32xf32>
    %c0_17 = arith.constant 0 : index
    %c0_18 = arith.constant 0 : index
    %16 = vector.load %arg10[%c0_17, %c0_18] : memref<32x32xf32, #tpu.memory_space<vmem>>, vector<32x32xf32>
    %cst_19 = arith.constant dense<0.000000e+00> : vector<24x32xf32>
    %17 = tpu.matmul %15, %16, %cst_19 {dimension_numbers = #tpu.dot_dimension_numbers<[1], [0], [0], [1], [0, 0, 1, 1], [], []>} : vector<24x32xf32>, vector<32x32xf32>, vector<24x32xf32> -> vector<24x32xf32>
    %c0_20 = arith.constant 0 : index
    %c0_21 = arith.constant 0 : index
    %18 = vector.load %arg11[%c0_20, %c0_21] : memref<1x32xf32, #tpu.memory_space<vmem>>, vector<1x32xf32>
    %19 = vector.broadcast %18 : vector<1x32xf32> to vector<24x32xf32>
    %20 = arith.addf %17, %19 : vector<24x32xf32>
    %c0_22 = arith.constant 0 : index
    %c0_23 = arith.constant 0 : index
    %c0_24 = arith.constant 0 : index
    %21 = vector.load %arg5[%c0_22, %c0_23, %c0_24] : memref<1x1x24xf32, #tpu.memory_space<vmem>>, vector<1x1x24xf32>
    %22 = vector.shape_cast %21 : vector<1x1x24xf32> to vector<1x24xf32>
    %cst_25 = arith.constant 5.000000e-01 : f32
    %23 = vector.broadcast %cst_25 : f32 to vector<1x24xf32>
    %24 = arith.cmpf ogt, %22, %23 : vector<1x24xf32>
    %cst_26 = arith.constant -1.000000e+30 : f32
    %cst_27 = arith.constant 0.000000e+00 : f32
    %25 = vector.broadcast %cst_26 : f32 to vector<1x24xf32>
    %26 = vector.broadcast %cst_27 : f32 to vector<1x24xf32>
    %27 = arith.select %24, %25, %26 : vector<1x24xi1>, vector<1x24xf32>
    %28 = vector.extract_strided_slice %6 {offsets = [0, 0], sizes = [16, 8], strides = [1, 1]} : vector<16x32xf32> to vector<16x8xf32>
    %cst_28 = arith.constant 0.353553385 : f32
    %29 = vector.broadcast %cst_28 : f32 to vector<16x8xf32>
    %30 = arith.mulf %28, %29 : vector<16x8xf32>
    %31 = vector.extract_strided_slice %13 {offsets = [0, 0], sizes = [24, 8], strides = [1, 1]} : vector<24x32xf32> to vector<24x8xf32>
    %32 = vector.extract_strided_slice %20 {offsets = [0, 0], sizes = [24, 8], strides = [1, 1]} : vector<24x32xf32> to vector<24x8xf32>
    %cst_29 = arith.constant dense<0.000000e+00> : vector<16x24xf32>
    %33 = tpu.matmul %30, %31, %cst_29 {dimension_numbers = #tpu.dot_dimension_numbers<[1], [1], [0], [0], [0, 0, 1, 0], [], []>} : vector<16x8xf32>, vector<24x8xf32>, vector<16x24xf32> -> vector<16x24xf32>
    %34 = vector.broadcast %27 : vector<1x24xf32> to vector<16x24xf32>
    %35 = arith.addf %33, %34 : vector<16x24xf32>
    %cst_30 = arith.constant dense<0xFF800000> : vector<16xf32>
    %36 = vector.multi_reduction <maximumf>, %35, %cst_30 [1] : vector<16x24xf32> to vector<16xf32>
    %37 = vector.shape_cast %36 : vector<16xf32> to vector<16x1xf32>
    %38 = vector.broadcast %37 : vector<16x1xf32> to vector<16x24xf32>
    %39 = arith.subf %35, %38 : vector<16x24xf32>
    %40 = math.exp %39 : vector<16x24xf32>
    %cst_31 = arith.constant dense<0.000000e+00> : vector<16xf32>
    %41 = vector.multi_reduction <add>, %40, %cst_31 [1] : vector<16x24xf32> to vector<16xf32>
    %42 = vector.shape_cast %41 : vector<16xf32> to vector<16x1xf32>
    %43 = tpu.reciprocal %42 {approx = true} : vector<16x1xf32> -> vector<16x1xf32>
    %44 = vector.broadcast %43 : vector<16x1xf32> to vector<16x24xf32>
    %45 = arith.mulf %40, %44 : vector<16x24xf32>
    %cst_32 = arith.constant dense<0.000000e+00> : vector<16x8xf32>
    %46 = tpu.matmul %45, %32, %cst_32 {dimension_numbers = #tpu.dot_dimension_numbers<[1], [0], [0], [1], [0, 0, 1, 1], [], []>} : vector<16x24xf32>, vector<24x8xf32>, vector<16x8xf32> -> vector<16x8xf32>
    %47 = vector.extract_strided_slice %6 {offsets = [0, 8], sizes = [16, 8], strides = [1, 1]} : vector<16x32xf32> to vector<16x8xf32>
    %cst_33 = arith.constant 0.353553385 : f32
    %48 = vector.broadcast %cst_33 : f32 to vector<16x8xf32>
    %49 = arith.mulf %47, %48 : vector<16x8xf32>
    %50 = vector.extract_strided_slice %13 {offsets = [0, 8], sizes = [24, 8], strides = [1, 1]} : vector<24x32xf32> to vector<24x8xf32>
    %51 = vector.extract_strided_slice %20 {offsets = [0, 8], sizes = [24, 8], strides = [1, 1]} : vector<24x32xf32> to vector<24x8xf32>
    %cst_34 = arith.constant dense<0.000000e+00> : vector<16x24xf32>
    %52 = tpu.matmul %49, %50, %cst_34 {dimension_numbers = #tpu.dot_dimension_numbers<[1], [1], [0], [0], [0, 0, 1, 0], [], []>} : vector<16x8xf32>, vector<24x8xf32>, vector<16x24xf32> -> vector<16x24xf32>
    %53 = vector.broadcast %27 : vector<1x24xf32> to vector<16x24xf32>
    %54 = arith.addf %52, %53 : vector<16x24xf32>
    %cst_35 = arith.constant dense<0xFF800000> : vector<16xf32>
    %55 = vector.multi_reduction <maximumf>, %54, %cst_35 [1] : vector<16x24xf32> to vector<16xf32>
    %56 = vector.shape_cast %55 : vector<16xf32> to vector<16x1xf32>
    %57 = vector.broadcast %56 : vector<16x1xf32> to vector<16x24xf32>
    %58 = arith.subf %54, %57 : vector<16x24xf32>
    %59 = math.exp %58 : vector<16x24xf32>
    %cst_36 = arith.constant dense<0.000000e+00> : vector<16xf32>
    %60 = vector.multi_reduction <add>, %59, %cst_36 [1] : vector<16x24xf32> to vector<16xf32>
    %61 = vector.shape_cast %60 : vector<16xf32> to vector<16x1xf32>
    %62 = tpu.reciprocal %61 {approx = true} : vector<16x1xf32> -> vector<16x1xf32>
    %63 = vector.broadcast %62 : vector<16x1xf32> to vector<16x24xf32>
    %64 = arith.mulf %59, %63 : vector<16x24xf32>
    %cst_37 = arith.constant dense<0.000000e+00> : vector<16x8xf32>
    %65 = tpu.matmul %64, %51, %cst_37 {dimension_numbers = #tpu.dot_dimension_numbers<[1], [0], [0], [1], [0, 0, 1, 1], [], []>} : vector<16x24xf32>, vector<24x8xf32>, vector<16x8xf32> -> vector<16x8xf32>
    %66 = vector.extract_strided_slice %6 {offsets = [0, 16], sizes = [16, 8], strides = [1, 1]} : vector<16x32xf32> to vector<16x8xf32>
    %cst_38 = arith.constant 0.353553385 : f32
    %67 = vector.broadcast %cst_38 : f32 to vector<16x8xf32>
    %68 = arith.mulf %66, %67 : vector<16x8xf32>
    %69 = vector.extract_strided_slice %13 {offsets = [0, 16], sizes = [24, 8], strides = [1, 1]} : vector<24x32xf32> to vector<24x8xf32>
    %70 = vector.extract_strided_slice %20 {offsets = [0, 16], sizes = [24, 8], strides = [1, 1]} : vector<24x32xf32> to vector<24x8xf32>
    %cst_39 = arith.constant dense<0.000000e+00> : vector<16x24xf32>
    %71 = tpu.matmul %68, %69, %cst_39 {dimension_numbers = #tpu.dot_dimension_numbers<[1], [1], [0], [0], [0, 0, 1, 0], [], []>} : vector<16x8xf32>, vector<24x8xf32>, vector<16x24xf32> -> vector<16x24xf32>
    %72 = vector.broadcast %27 : vector<1x24xf32> to vector<16x24xf32>
    %73 = arith.addf %71, %72 : vector<16x24xf32>
    %cst_40 = arith.constant dense<0xFF800000> : vector<16xf32>
    %74 = vector.multi_reduction <maximumf>, %73, %cst_40 [1] : vector<16x24xf32> to vector<16xf32>
    %75 = vector.shape_cast %74 : vector<16xf32> to vector<16x1xf32>
    %76 = vector.broadcast %75 : vector<16x1xf32> to vector<16x24xf32>
    %77 = arith.subf %73, %76 : vector<16x24xf32>
    %78 = math.exp %77 : vector<16x24xf32>
    %cst_41 = arith.constant dense<0.000000e+00> : vector<16xf32>
    %79 = vector.multi_reduction <add>, %78, %cst_41 [1] : vector<16x24xf32> to vector<16xf32>
    %80 = vector.shape_cast %79 : vector<16xf32> to vector<16x1xf32>
    %81 = tpu.reciprocal %80 {approx = true} : vector<16x1xf32> -> vector<16x1xf32>
    %82 = vector.broadcast %81 : vector<16x1xf32> to vector<16x24xf32>
    %83 = arith.mulf %78, %82 : vector<16x24xf32>
    %cst_42 = arith.constant dense<0.000000e+00> : vector<16x8xf32>
    %84 = tpu.matmul %83, %70, %cst_42 {dimension_numbers = #tpu.dot_dimension_numbers<[1], [0], [0], [1], [0, 0, 1, 1], [], []>} : vector<16x24xf32>, vector<24x8xf32>, vector<16x8xf32> -> vector<16x8xf32>
    %85 = vector.extract_strided_slice %6 {offsets = [0, 24], sizes = [16, 8], strides = [1, 1]} : vector<16x32xf32> to vector<16x8xf32>
    %cst_43 = arith.constant 0.353553385 : f32
    %86 = vector.broadcast %cst_43 : f32 to vector<16x8xf32>
    %87 = arith.mulf %85, %86 : vector<16x8xf32>
    %88 = vector.extract_strided_slice %13 {offsets = [0, 24], sizes = [24, 8], strides = [1, 1]} : vector<24x32xf32> to vector<24x8xf32>
    %89 = vector.extract_strided_slice %20 {offsets = [0, 24], sizes = [24, 8], strides = [1, 1]} : vector<24x32xf32> to vector<24x8xf32>
    %cst_44 = arith.constant dense<0.000000e+00> : vector<16x24xf32>
    %90 = tpu.matmul %87, %88, %cst_44 {dimension_numbers = #tpu.dot_dimension_numbers<[1], [1], [0], [0], [0, 0, 1, 0], [], []>} : vector<16x8xf32>, vector<24x8xf32>, vector<16x24xf32> -> vector<16x24xf32>
    %91 = vector.broadcast %27 : vector<1x24xf32> to vector<16x24xf32>
    %92 = arith.addf %90, %91 : vector<16x24xf32>
    %cst_45 = arith.constant dense<0xFF800000> : vector<16xf32>
    %93 = vector.multi_reduction <maximumf>, %92, %cst_45 [1] : vector<16x24xf32> to vector<16xf32>
    %94 = vector.shape_cast %93 : vector<16xf32> to vector<16x1xf32>
    %95 = vector.broadcast %94 : vector<16x1xf32> to vector<16x24xf32>
    %96 = arith.subf %92, %95 : vector<16x24xf32>
    %97 = math.exp %96 : vector<16x24xf32>
    %cst_46 = arith.constant dense<0.000000e+00> : vector<16xf32>
    %98 = vector.multi_reduction <add>, %97, %cst_46 [1] : vector<16x24xf32> to vector<16xf32>
    %99 = vector.shape_cast %98 : vector<16xf32> to vector<16x1xf32>
    %100 = tpu.reciprocal %99 {approx = true} : vector<16x1xf32> -> vector<16x1xf32>
    %101 = vector.broadcast %100 : vector<16x1xf32> to vector<16x24xf32>
    %102 = arith.mulf %97, %101 : vector<16x24xf32>
    %cst_47 = arith.constant dense<0.000000e+00> : vector<16x8xf32>
    %103 = tpu.matmul %102, %89, %cst_47 {dimension_numbers = #tpu.dot_dimension_numbers<[1], [0], [0], [1], [0, 0, 1, 1], [], []>} : vector<16x24xf32>, vector<24x8xf32>, vector<16x8xf32> -> vector<16x8xf32>
    %104 = tpu.concatenate %46, %65, %84, %103 in 1 : vector<16x8xf32>, vector<16x8xf32>, vector<16x8xf32>, vector<16x8xf32> -> vector<16x32xf32>
    %c0_48 = arith.constant 0 : index
    %c0_49 = arith.constant 0 : index
    %105 = vector.load %arg12[%c0_48, %c0_49] : memref<32x32xf32, #tpu.memory_space<vmem>>, vector<32x32xf32>
    %cst_50 = arith.constant dense<0.000000e+00> : vector<16x32xf32>
    %106 = tpu.matmul %104, %105, %cst_50 {dimension_numbers = #tpu.dot_dimension_numbers<[1], [0], [0], [1], [0, 0, 1, 1], [], []>} : vector<16x32xf32>, vector<32x32xf32>, vector<16x32xf32> -> vector<16x32xf32>
    %c0_51 = arith.constant 0 : index
    %c0_52 = arith.constant 0 : index
    %107 = vector.load %arg13[%c0_51, %c0_52] : memref<1x32xf32, #tpu.memory_space<vmem>>, vector<1x32xf32>
    %108 = vector.broadcast %107 : vector<1x32xf32> to vector<16x32xf32>
    %109 = arith.addf %106, %108 : vector<16x32xf32>
    %c0_53 = arith.constant 0 : index
    %c0_54 = arith.constant 0 : index
    %c0_55 = arith.constant 0 : index
    %110 = vector.load %arg4[%c0_53, %c0_54, %c0_55] : memref<1x16x32xf32, #tpu.memory_space<vmem>>, vector<1x16x32xf32>
    %111 = vector.shape_cast %110 : vector<1x16x32xf32> to vector<16x32xf32>
    %112 = arith.addf %111, %109 : vector<16x32xf32>
    %cst_56 = arith.constant dense<0.000000e+00> : vector<16xf32>
    %113 = vector.multi_reduction <add>, %112, %cst_56 [1] : vector<16x32xf32> to vector<16xf32>
    %114 = vector.shape_cast %113 : vector<16xf32> to vector<16x1xf32>
    %cst_57 = arith.constant 3.200000e+01 : f32
    %115 = vector.broadcast %cst_57 : f32 to vector<16x1xf32>
    %116 = arith.divf %114, %115 : vector<16x1xf32>
    %117 = vector.broadcast %116 : vector<16x1xf32> to vector<16x32xf32>
    %118 = arith.subf %112, %117 : vector<16x32xf32>
    %119 = arith.mulf %118, %118 : vector<16x32xf32>
    %cst_58 = arith.constant dense<0.000000e+00> : vector<16xf32>
    %120 = vector.multi_reduction <add>, %119, %cst_58 [1] : vector<16x32xf32> to vector<16xf32>
    %121 = vector.shape_cast %120 : vector<16xf32> to vector<16x1xf32>
    %cst_59 = arith.constant 3.200000e+01 : f32
    %122 = vector.broadcast %cst_59 : f32 to vector<16x1xf32>
    %123 = arith.divf %121, %122 : vector<16x1xf32>
    %124 = vector.broadcast %116 : vector<16x1xf32> to vector<16x32xf32>
    %125 = arith.subf %112, %124 : vector<16x32xf32>
    %cst_60 = arith.constant 9.99999974E-6 : f32
    %126 = vector.broadcast %cst_60 : f32 to vector<16x1xf32>
    %127 = arith.addf %123, %126 : vector<16x1xf32>
    %128 = math.rsqrt %127 : vector<16x1xf32>
    %129 = vector.broadcast %128 : vector<16x1xf32> to vector<16x32xf32>
    %130 = arith.mulf %125, %129 : vector<16x32xf32>
    %c0_61 = arith.constant 0 : index
    %c0_62 = arith.constant 0 : index
    %131 = vector.load %arg14[%c0_61, %c0_62] : memref<1x32xf32, #tpu.memory_space<vmem>>, vector<1x32xf32>
    %132 = vector.broadcast %131 : vector<1x32xf32> to vector<16x32xf32>
    %133 = arith.mulf %130, %132 : vector<16x32xf32>
    %c0_63 = arith.constant 0 : index
    %c0_64 = arith.constant 0 : index
    %134 = vector.load %arg15[%c0_63, %c0_64] : memref<1x32xf32, #tpu.memory_space<vmem>>, vector<1x32xf32>
    %135 = vector.broadcast %134 : vector<1x32xf32> to vector<16x32xf32>
    %136 = arith.addf %133, %135 : vector<16x32xf32>
    %c0_65 = arith.constant 0 : index
    %c0_66 = arith.constant 0 : index
    %c0_67 = arith.constant 0 : index
    %137 = vector.load %arg16[%c0_65, %c0_66, %c0_67] : memref<1x16x32xf32, #tpu.memory_space<vmem>>, vector<1x16x32xf32>
    %138 = vector.shape_cast %137 : vector<1x16x32xf32> to vector<16x32xf32>
    %139 = vector.shape_cast %136 : vector<16x32xf32> to vector<1x16x32xf32>
    tpu.vector_store %arg16[%c0_65, %c0_66, %c0_67], %139 {strides = array<i32>} : memref<1x16x32xf32, #tpu.memory_space<vmem>>, vector<1x16x32xf32>,
    return
  }
  func.func @transform_0(%arg0: i32) -> (i32, i32, i32) {
    %c0_i32 = arith.constant 0 : i32
    %c0_i32_0 = arith.constant 0 : i32
    %c0_i32_1 = arith.constant 0 : i32
    return %arg0, %c0_i32, %c0_i32_0 : i32, i32, i32
  }
  func.func @transform_1(%arg0: i32) -> (i32, i32, i32) {
    %c0_i32 = arith.constant 0 : i32
    %c0_i32_0 = arith.constant 0 : i32
    %c0_i32_1 = arith.constant 0 : i32
    return %arg0, %c0_i32, %c0_i32_0 : i32, i32, i32
  }
  func.func @transform_2(%arg0: i32) -> (i32, i32, i32) {
    %c0_i32 = arith.constant 0 : i32
    %c0_i32_0 = arith.constant 0 : i32
    %c0_i32_1 = arith.constant 0 : i32
    return %arg0, %c0_i32, %c0_i32_0 : i32, i32, i32
  }
  func.func @transform_3(%arg0: i32) -> (i32, i32, i32) {
    %c0_i32 = arith.constant 0 : i32
    %c0_i32_0 = arith.constant 0 : i32
    %c0_i32_1 = arith.constant 0 : i32
    return %arg0, %c0_i32, %c0_i32_0 : i32, i32, i32
  }
  func.func @transform_4(%arg0: i32) -> (i32, i32, i32) {
    %c0_i32 = arith.constant 0 : i32
    %c0_i32_0 = arith.constant 0 : i32
    %c0_i32_1 = arith.constant 0 : i32
    return %arg0, %c0_i32, %c0_i32_0 : i32, i32, i32
  }
  func.func @transform_5(%arg0: i32) -> (i32, i32) {
    %c0_i32 = arith.constant 0 : i32
    %c0_i32_0 = arith.constant 0 : i32
    %c0_i32_1 = arith.constant 0 : i32
    return %c0_i32, %c0_i32_0 : i32, i32
  }
  func.func @transform_6(%arg0: i32) -> (i32, i32) {
    %c0_i32 = arith.constant 0 : i32
    %c0_i32_0 = arith.constant 0 : i32
    %c0_i32_1 = arith.constant 0 : i32
    return %c0_i32, %c0_i32_0 : i32, i32
  }
  func.func @transform_7(%arg0: i32) -> (i32, i32) {
    %c0_i32 = arith.constant 0 : i32
    %c0_i32_0 = arith.constant 0 : i32
    %c0_i32_1 = arith.constant 0 : i32
    return %c0_i32, %c0_i32_0 : i32, i32
  }
  func.func @transform_8(%arg0: i32) -> (i32, i32) {
    %c0_i32 = arith.constant 0 : i32
    %c0_i32_0 = arith.constant 0 : i32
    %c0_i32_1 = arith.constant 0 : i32
    return %c0_i32, %c0_i32_0 : i32, i32
  }
  func.func @transform_9(%arg0: i32) -> (i32, i32) {
    %c0_i32 = arith.constant 0 : i32
    %c0_i32_0 = arith.constant 0 : i32
    %c0_i32_1 = arith.constant 0 : i32
    return %c0_i32, %c0_i32_0 : i32, i32
  }
  func.func @transform_10(%arg0: i32) -> (i32, i32) {
    %c0_i32 = arith.constant 0 : i32
    %c0_i32_0 = arith.constant 0 : i32
    %c0_i32_1 = arith.constant 0 : i32
    return %c0_i32, %c0_i32_0 : i32, i32
  }
  func.func @transform_11(%arg0: i32) -> (i32, i32) {
    %c0_i32 = arith.constant 0 : i32
    %c0_i32_0 = arith.constant 0 : i32
    %c0_i32_1 = arith.constant 0 : i32
    return %c0_i32, %c0_i32_0 : i32, i32
  }
  func.func @transform_12(%arg0: i32) -> (i32, i32) {
    %c0_i32 = arith.constant 0 : i32
    %c0_i32_0 = arith.constant 0 : i32
    %c0_i32_1 = arith.constant 0 : i32
    return %c0_i32, %c0_i32_0 : i32, i32
  }
  func.func @transform_13(%arg0: i32) -> (i32, i32) {
    %c0_i32 = arith.constant 0 : i32
    %c0_i32_0 = arith.constant 0 : i32
    %c0_i32_1 = arith.constant 0 : i32
    return %c0_i32, %c0_i32_0 : i32, i32
  }
  func.func @transform_14(%arg0: i32) -> (i32, i32) {
    %c0_i32 = arith.constant 0 : i32
    %c0_i32_0 = arith.constant 0 : i32
    %c0_i32_1 = arith.constant 0 : i32
    return %c0_i32, %c0_i32_0 : i32, i32
  }
  func.func @transform_15(%arg0: i32) -> (i32, i32, i32) {
    %c0_i32 = arith.constant 0 : i32
    %c0_i32_0 = arith.constant 0 : i32
    %c0_i32_1 = arith.constant 0 : i32
    return %arg0, %c0_i32, %c0_i32_0 : i32, i32, i32
  }
}

</mosaic_0001>

<bundles_post_ra>
// kernel: tpu_custom_call.1
= control target key start
LH: loop header
LB: loop body
LE: loop exit
PB: predicated region body
PF: predicated region fallthrough
CT: control target
= control target key end

     0   :  { %s3629_s0 = inlined_call_operand.hbm [shape: f32[2,16,32], index: 0, kind: input, shape index: {}]   ;;  %s3630_s1 = inlined_call_operand.hbm [shape: f32[2,24,32], index: 1, kind: input, shape index: {}]   ;;  %s3631_s2 = inlined_call_operand.hbm [shape: f32[2,24,32], index: 2, kind: input, shape index: {}]   ;;  %s3632_s3 = inlined_call_operand.hbm [shape: f32[2,16,32], index: 3, kind: input, shape index: {}]   ;;  %s3633_s4 = inlined_call_operand.vmem [shape: f32[2,1,24], index: 4, kind: input, shape index: {}]   ;;  %s3634_s5 = inlined_call_operand.hbm [shape: f32[32,32], index: 5, kind: input, shape index: {}]   ;;  %s3635_s6 = inlined_call_operand.vmem [shape: f32[1,32], index: 6, kind: input, shape index: {}]   ;;  %s3636_s7 = inlined_call_operand.hbm [shape: f32[32,32], index: 7, kind: input, shape index: {}]   ;;  %s3637_s8 = inlined_call_operand.vmem [shape: f32[1,32], index: 8, kind: input, shape index: {}]   ;;  %s3638_s9 = inlined_call_operand.hbm [shape: f32[32,32], index: 9, kind: input, shape index: {}]   ;;  %s3639_s10 = inlined_call_operand.vmem [shape: f32[1,32], index: 10, kind: input, shape index: {}]   ;;  %s3640_s11 = inlined_call_operand.hbm [shape: f32[32,32], index: 11, kind: input, shape index: {}]   ;;  %s3641_s12 = inlined_call_operand.vmem [shape: f32[1,32], index: 12, kind: input, shape index: {}]   ;;  %s3642_s13 = inlined_call_operand.vmem [shape: f32[1,32], index: 13, kind: input, shape index: {}]   ;;  %s3643_s14 = inlined_call_operand.vmem [shape: f32[1,32], index: 14, kind: input, shape index: {}]   ;;  %s3644_s15 = inlined_call_operand.hbm [shape: f32[2,16,32], index: 15, kind: output, shape index: {}]  }
   0x1   :  { %3669 = sst [smem:[#allocation30_spill]] %s3629_s0 }
   0x2   :  { %3670 = sst [smem:[#allocation31_spill]] %s3630_s1 }
   0x3   :  { %3671 = sst [smem:[#allocation32_spill]] %s3634_s5 }
   0x4   :  { %3672 = sst [smem:[#allocation33_spill]] %s3636_s7 }
   0x5   :  { %3673 = sst [smem:[#allocation34_spill]] %s3638_s9 }
   0x6   :  { %3674 = sst [smem:[#allocation35_spill]] %s3640_s11 }
   0x7   :  { %3675 = sst [smem:[#allocation36_spill]] %s3641_s12 }
   0x8   :  { %3676 = sst [smem:[#allocation37_spill]] %s3642_s13 }
   0x9   :  { %3677 = sst [smem:[#allocation38_spill]] %s3643_s14 }
   0xa   :  { %3678 = sst [smem:[#allocation39_spill]] %s3644_s15 }
   0xb   :  { %20 = vsyncpa [#allocation3], 0 }
   0xc   :  { %22 = vsyncpa [#allocation3 + $0x1], 0 }
   0xd   :  { %23 = vsyncpa [#allocation6], 0 }
   0xe   :  { %25 = vsyncpa [#allocation6 + $0x1], 0 }
   0xf   :  { %26 = vsyncpa [#allocation9], 0 }
  0x10   :  { %28 = vsyncpa [#allocation9 + $0x1], 0 }
  0x11   :  { %29 = vsyncpa [#allocation12], 0 }
  0x12   :  { %30 = vsyncpa [#allocation15], 0 }
  0x13   :  { %31 = vsyncpa [#allocation4], 0 }
  0x14   :  { %33 = vsyncpa [#allocation4 + $0x1], 0  ;;  %s3032_s18 = smov 0   ;;  %s3034_s19 = smov 0  }
  0x15   :  { %s3036_s20 = smov 0   ;;  %s3038_s21 = smov 0  }
  0x16 LB: > { %3679 = sst [smem:[#allocation24_spill]] %s2918_s18  ;;  %s3053_s22 = sadd.s32 4294967295, %s2930_s21   ;;  %s2930_s21 = sphi %s3038_s21, %s3726_s21   ;;  %s2926_s20 = sphi %s3036_s20, %s3728_s20   ;;  %s2922_s19 = sphi %s3034_s19, %s3730_s19   ;;  %s2918_s18 = sphi %s3032_s18, %s3729_s18  }
  0x17   : > { %3680 = sst [smem:[#allocation25_spill]] %s2926_s20  ;;  %s2207_s23 = sadd.s32 4294967294, %s2930_s21  }
  0x18   : > { %p59_p0 = scmp.ne.s32.totalorder %s2922_s19, %s2918_s18  ;;  %p3659_p1 = scmp.eq.s32.totalorder %s3053_s22, 0 }
  0x19   : > { %p397_p2 = scmp.eq.s32.totalorder %s3053_s22, 1  ;;  %p403_p3 = scmp.eq.s32.totalorder %s2207_s23, 1 }
  0x1a   : > { %p3062_p4 = por %p3659_p1, %p59_p0  ;;  %p2208_p5 = scmp.ge.s32.totalorder %s2930_s21, 1 }
  0x1b   : > { %p3067_p6 = por %p403_p3, %p59_p0  ;;  %p410_p7 = scmp.lt.s32.totalorder %s2930_s21, 3 }
  0x1c   : > { %s3681_s24 = scalar_select %p3062_p4, 1, 0 }
  0x1d   : > { %s3682_s25 = scalar_select %p3067_p6, 1, 0 }
  0x1e   : > { %p3072_p8 = pnand %p2208_p5, %p410_p7  ;;  %s2932_s27 = smov [#allocation10]  }
  0x1f   : > { %3683 = sst [smem:[#allocation26_spill]] %s3682_s25  ;;  %s422_s28 = sshll.u32 %s2932_s27, 4  ;;  %s423_s28 = int_to_ptr.vmem [resolvable:$true] %s422_s28 }
  0x20   : > { %s3684_s26 = scalar_select %p3072_p8, 1, 0 }
  0x21   : > { %p2507_p9 = pneg %p3072_p8  ;;  %s2933_s30 = smov [#allocation11]  }
  0x22   : > { %s438_s16 = sshll.u32 %s2933_s30, 4  ;;  %s2641_s17 = scalar_lea.vmem %s423_s28, 512  ;;  %s439_s16 = int_to_ptr.vmem [resolvable:$true] %s438_s16 }
  0x23   : > { %p3081_p11 = pnand %p2507_p9, %p3659_p1  ;;  %p2642_p13 = scmp.ne.s32.totalorder %s423_s28, %s2641_s17 }
  0x24   : > { %p2649_p5 = scmp.lt.s32.totalorder %s423_s28, %s423_s28  ;;  %p2650_p7 = scmp.lt.s32.totalorder %s2641_s17, %s2641_s17 }
  0x25   : > { %s3685_s29 = scalar_select %p3081_p11, 1, 0 }
  0x26   : > { %p3660_p12 = pneg %p3081_p11  ;;  %p2651_p10 = por %p2650_p7, %p2649_p5 }
  0x28   : > { %p2644_p0 = pnand %p2642_p13, %p3660_p12 }
  0x2a   : > { %p2645_p3 = pneg %p2644_p0 }
  0x2c   : > { %p2652_p9 = pnand %p2651_p10, %p2645_p3 }
  0x2e   : > { %2655 = shalt.err (!%p2652_p9)
}
  0x2f   : > { %s3648_s23 = smov 128   ;;  %s3650_s27 = smov 8  }
  0x30   : > { %s3686_s5 = sld [smem:[#allocation32_spill]]  ;;  %s2667_s18 = scalar_lea.vmem %s439_s16, 512 }
  0x31   : > { %p2668_p13 = scmp.ne.s32.totalorder %s439_s16, %s2667_s18  ;;  %p2675_p10 = scmp.lt.s32.totalorder %s439_s16, %s439_s16 }
  0x32   : > { %p2676_p3 = scmp.lt.s32.totalorder %s2667_s18, %s2667_s18 }
  0x33   : > { %p2670_p0 = pnand %p2668_p13, %p3660_p12 }
  0x34   : > { %p2677_p7 = por %p2676_p3, %p2675_p10 }
  0x35   : > { %p2671_p5 = pneg %p2670_p0 }
  0x36   : > { %2510 = dma.hbm_to_vmem [thread:$0]  (!%p3081_p11), %s3686_s5, 512, %s423_s28, [#allocation9], %s3648_s23, %s3648_s23, %s3650_s27  }
  0x37   : > { %p2678_p9 = pnand %p2677_p7, %p2671_p5 }
  0x39   : > { %2681 = shalt.err (!%p2678_p9)
}
  0x3a   : > { %s3687_s7 = sld [smem:[#allocation33_spill]]  ;;  %s3110_s18 = sadd.s32 1, %s2930_s21  }
  0x3b   : > { %3688 = sst [smem:[#allocation27_spill]] %s3110_s18  ;;  %s46_s25 = sadd.s32 1, %s2926_s20 }
  0x3c   : > { %s43_s28 = ssub.s32 %s2930_s21, %s3110_s18  ;;  %p53_p13 = scmp.ne.s32.totalorder %s2926_s20, %s2922_s19 }
  0x3d   : > { %p44_p0 = scmp.eq.s32.totalorder %s43_s28, 0  ;;  %p54_p5 = scmp.eq.s32.totalorder %s2930_s21, 0 }
  0x3e   : > { %p3120_p10 = por %p397_p2, %p53_p13  ;;  %p2541_p3 = scmp.lt.s32.totalorder %s2930_s21, 2 }
  0x3f   : > { %s3126_s30 = scalar_select %p44_p0, %s2926_s20, %s46_s25  }
  0x40   : > { %2513 = dma.hbm_to_vmem [thread:$0]  (!%p3081_p11), %s3687_s7, 512, %s439_s16, [#allocation12], %s3648_s23, %s3648_s23, %s3650_s27  }
  0x41   : > { %s3689_s15 = scalar_select %p3120_p10, 1, 0 }
  0x42   : > { %3691 = sst [smem:[#allocation29_spill]] %s3126_s30  ;;  %p55_p7 = por %p54_p5, %p53_p13 }
  0x43   : > { %3690 = sst [smem:[#allocation28_spill]] %s3689_s15  ;;  %s3129_s16 = sand.u32 1, %s2926_s20  }
  0x44   : > { %s3661_s17 = sand.u32 1, %s2930_s21   ;;  %s3657_s23 = smul.u32 24, %s3129_s16 }
  0x45   : > { %p3133_p9 = pnand %p2541_p3, %p55_p7  ;;  %s3658_s28 = smul.u32 384, %s2930_s21 }
  0x46   : > { %s518_s5 = scalar_lea.vmem [#allocation5], %s3657_s23  ;;  %s3693_s1 = sld [smem:[#allocation31_spill]] }
  0x47   : > { %s525_s7 = sshll.u32 %s518_s5, 4  ;;  %s3151_s20 = scalar_lea.sflag [#allocation6], %s3661_s17  ;;  %s3147_s7 = int_to_ptr.vmem [resolvable:$true] %s525_s7 }
  0x48   : > { %p3157_p13 = pneg %p3133_p9 }
  0x4c   : > { %s3145_s30 = scalar_lea.hbm %s3693_s1, %s3658_s28  ;;  %s2687_s25 = scalar_lea.hbm %s3693_s1, 768 }
  0x4d   : > { %s2682_s15 = scalar_lea.hbm %s3145_s30, 384  ;;  %p2688_p3 = scmp.lt.s32.totalorder %s3145_s30, %s3693_s1 }
  0x4e   : > { %p2683_p2 = scmp.ne.s32.totalorder %s3145_s30, %s2682_s15  ;;  %p2689_p7 = scmp.lt.s32.totalorder %s2687_s25, %s2682_s15 }
  0x50   : > { %p2685_p0 = pnand %p3157_p13, %p2683_p2  ;;  %p2690_p1 = por %p2689_p7, %p2688_p3 }
  0x52   : > { %p2686_p5 = pneg %p2685_p0 }
  0x54   : > { %p2691_p12 = pnand %p2690_p1, %p2686_p5 }
  0x56   : > { %2694 = shalt.err (!%p2691_p12)
}
  0x57   : > { %s2695_s17 = scalar_lea.vmem %s3147_s7, 384  ;;  %s2936_s13 = smov [#allocation5]  }
  0x58   : > { %p2696_p6 = scmp.ne.s32.totalorder %s3147_s7, %s2695_s17  ;;  %s2700_s5 = sshll.u32 %s2936_s13, 4  ;;  %s2701_s5 = int_to_ptr.vmem [resolvable:$false] %s2700_s5 }
  0x59   : > { %s2702_s18 = scalar_lea.vmem %s2701_s5, 768  ;;  %p2703_p10 = scmp.lt.s32.totalorder %s3147_s7, %s2701_s5 }
  0x5a   : > { %p2698_p2 = pnand %p2696_p6, %p3157_p13  ;;  %p2704_p4 = scmp.lt.s32.totalorder %s2702_s18, %s2695_s17 }
  0x5c   : > { %p2699_p0 = pneg %p2698_p2  ;;  %p2705_p8 = por %p2704_p4, %p2703_p10 }
  0x5e   : > { %p2706_p11 = pnand %p2705_p8, %p2699_p0 }
  0x60   : > { %2709 = shalt.err (!%p2706_p11)
}
  0x61   : > { %s3695_s14 = smov 8   ;;  %s3696_s15 = smov 128  }
  0x62   : > { %2526 = dma.hbm_to_vmem [thread:$0]  (!%p3133_p9), %s3145_s30, 384, %s3147_s7, %s3151_s20, %s3696_s15, %s3696_s15, %s3695_s14  }
  0x63   : > { %s2937_s28 = smov [#allocation13]   ;;  %s2938_s13 = smov [#allocation14]  }
  0x64   : > { %s454_s25 = sshll.u32 %s2937_s28, 4  ;;  %s470_s1 = sshll.u32 %s2938_s13, 4  ;;  %s455_s25 = int_to_ptr.vmem [resolvable:$true] %s454_s25  ;;  %s471_s1 = int_to_ptr.vmem [resolvable:$true] %s470_s1 }
  0x65   : > { %s2721_s5 = scalar_lea.vmem %s455_s25, 512  ;;  %p3697_p4 = scmp.ne.s32.totalorder %s3685_s29, 0 }
  0x66   : > { %p2722_p1 = scmp.ne.s32.totalorder %s455_s25, %s2721_s5  ;;  %p2729_p12 = scmp.lt.s32.totalorder %s455_s25, %s455_s25 }
  0x67   : > { %p3698_p6 = pneg %p3697_p4  ;;  %p2730_p10 = scmp.lt.s32.totalorder %s2721_s5, %s2721_s5 }
  0x69   : > { %p2724_p8 = pnand %p2722_p1, %p3698_p6  ;;  %p2731_p5 = por %p2730_p10, %p2729_p12 }
  0x6b   : > { %p2725_p11 = pneg %p2724_p8 }
  0x6d   : > { %p2732_p3 = pnand %p2731_p5, %p2725_p11 }
  0x6f   : > { %2735 = shalt.err (!%p2732_p3)
}
  0x70   : > { %s3699_s9 = sld [smem:[#allocation34_spill]]  ;;  %s2747_s17 = scalar_lea.vmem %s471_s1, 512 }
  0x71   : > { %p2748_p7 = scmp.ne.s32.totalorder %s471_s1, %s2747_s17  ;;  %p3700_p2 = pmov %p3698_p6 }
  0x72   : > { %p2755_p6 = scmp.lt.s32.totalorder %s471_s1, %s471_s1  ;;  %p2756_p8 = scmp.lt.s32.totalorder %s2747_s17, %s2747_s17 }
  0x73   : > { %p2750_p0 = pnand %p2748_p7, %p3700_p2 }
  0x74   : > { %p2757_p11 = por %p2756_p8, %p2755_p6 }
  0x75   : > { %p2751_p1 = pneg %p2750_p0 }
  0x76   : > { %2516 = dma.hbm_to_vmem [thread:$0]  (!%p3697_p4), %s3699_s9, 512, %s455_s25, [#allocation12], %s3696_s15, %s3696_s15, %s3695_s14  }
  0x77   : > { %p2758_p12 = pnand %p2757_p11, %p2751_p1 }
  0x79   : > { %2761 = shalt.err (!%p2758_p12)
}
  0x7a   : > { %s3701_s11 = sld [smem:[#allocation35_spill]]  ;;  %s3668_s25 = sshll.u32 %s3129_s16, 4 }
  0x7b   : > { %s3667_s13 = sshll.u32 %s2930_s21, 8  ;;  %s3702_s0 = sld [smem:[#allocation30_spill]] }
  0x7c   : > { %s497_s30 = scalar_lea.vmem [#allocation2], %s3668_s25  ;;  %s494_s18 = scalar_lea.sflag [#allocation3], %s3129_s16 }
  0x7d   : > { %s504_s17 = sshll.u32 %s497_s30, 4  ;;  %s3216_s17 = int_to_ptr.vmem [resolvable:$true] %s504_s17 }
  0x80   : > { %2519 = dma.hbm_to_vmem [thread:$0]  (!%p3697_p4), %s3701_s11, 512, %s471_s1, [#allocation15], %s3696_s15, %s3696_s15, %s3695_s14  }
  0x81   : > { %s3212_s29 = scalar_lea.hbm %s3702_s0, %s3667_s13  ;;  %s2767_s5 = scalar_lea.hbm %s3702_s0, 512 }
  0x82   : > { %s2762_s28 = scalar_lea.hbm %s3212_s29, 256  ;;  %p2768_p3 = scmp.lt.s32.totalorder %s3212_s29, %s3702_s0 }
  0x83   : > { %p2763_p10 = scmp.ne.s32.totalorder %s3212_s29, %s2762_s28  ;;  %p2769_p7 = scmp.lt.s32.totalorder %s2767_s5, %s2762_s28 }
  0x85   : > { %p2765_p4 = pnand %p2763_p10, %p3157_p13  ;;  %p2770_p2 = por %p2769_p7, %p2768_p3 }
  0x87   : > { %p2766_p5 = pneg %p2765_p4 }
  0x89   : > { %p2771_p0 = pnand %p2770_p2, %p2766_p5 }
  0x8b   : > { %2774 = shalt.err (!%p2771_p0)
}
  0x8c   : > { %s2775_s30 = scalar_lea.vmem %s3216_s17, 256  ;;  %s2939_s25 = smov [#allocation2]  }
  0x8d   : > { %p2776_p1 = scmp.ne.s32.totalorder %s3216_s17, %s2775_s30  ;;  %s2780_s9 = sshll.u32 %s2939_s25, 4  ;;  %s2781_s9 = int_to_ptr.vmem [resolvable:$false] %s2780_s9 }
  0x8e   : > { %s2782_s1 = scalar_lea.vmem %s2781_s9, 512  ;;  %p2783_p11 = scmp.lt.s32.totalorder %s3216_s17, %s2781_s9 }
  0x8f   : > { %p2778_p6 = pnand %p2776_p1, %p3157_p13  ;;  %p2784_p12 = scmp.lt.s32.totalorder %s2782_s1, %s2775_s30 }
  0x91   : > { %p2779_p8 = pneg %p2778_p6  ;;  %p2785_p10 = por %p2784_p12, %p2783_p11 }
  0x93   : > { %p2786_p4 = pnand %p2785_p10, %p2779_p8 }
  0x95   : > { %2789 = shalt.err (!%p2786_p4)
}
  0x96   : > { %2523 = dma.hbm_to_vmem [thread:$0]  (!%p3133_p9), %s3212_s29, 256, %s3216_s17, %s494_s18, %s3696_s15, %s3696_s15, %s3695_s14  }
  0x97   : > { %s3703_s25 = sshll.u32 %s3129_s16, 4  ;;  %s3704_s5 = sshll.u32 %s2930_s21, 8 }
  0x98   : > { %s560_s13 = scalar_lea.vmem [#allocation8], %s3703_s25  ;;  %s3249_s9 = scalar_lea.hbm %s3632_s3, %s3704_s5 }
  0x99   : > { %s567_s28 = sshll.u32 %s560_s13, 4  ;;  %s3705_s1 = smul.u32 384, %s2930_s21  ;;  %s3258_s28 = int_to_ptr.vmem [resolvable:$true] %s567_s28 }
  0x9a   : > { %s3706_s29 = smul.u32 24, %s3129_s16  ;;  %s2795_s0 = scalar_lea.hbm %s3631_s2, 768 }
  0x9b   : > { %s3256_s12 = scalar_lea.hbm %s3631_s2, %s3705_s1 }
  0x9c   : > { %s539_s17 = scalar_lea.vmem [#allocation7], %s3706_s29  ;;  %s2790_s25 = scalar_lea.hbm %s3256_s12, 384 }
  0x9d   : > { %s546_s18 = sshll.u32 %s539_s17, 4  ;;  %p2791_p5 = scmp.ne.s32.totalorder %s3256_s12, %s2790_s25  ;;  %s547_s18 = int_to_ptr.vmem [resolvable:$true] %s546_s18 }
  0x9e   : > { %p2796_p2 = scmp.lt.s32.totalorder %s3256_s12, %s3631_s2  ;;  %p2797_p0 = scmp.lt.s32.totalorder %s2795_s0, %s2790_s25 }
  0x9f   : > { %p2793_p3 = pnand %p2791_p5, %p3157_p13 }
  0xa0   : > { %p2798_p1 = por %p2797_p0, %p2796_p2 }
  0xa1   : > { %p2794_p7 = pneg %p2793_p3 }
  0xa3   : > { %p2799_p6 = pnand %p2798_p1, %p2794_p7 }
  0xa5   : > { %2802 = shalt.err (!%p2799_p6)
}
  0xa6   : > { %s2803_s16 = scalar_lea.vmem %s547_s18, 384  ;;  %s2940_s30 = smov [#allocation7]  }
  0xa7   : > { %p2804_p8 = scmp.ne.s32.totalorder %s547_s18, %s2803_s16  ;;  %s2808_s1 = sshll.u32 %s2940_s30, 4  ;;  %s2809_s1 = int_to_ptr.vmem [resolvable:$false] %s2808_s1 }
  0xa8   : > { %s2810_s29 = scalar_lea.vmem %s2809_s1, 768  ;;  %p2811_p10 = scmp.lt.s32.totalorder %s547_s18, %s2809_s1 }
  0xa9   : > { %p2806_p11 = pnand %p2804_p8, %p3157_p13  ;;  %p2812_p4 = scmp.lt.s32.totalorder %s2810_s29, %s2803_s16 }
  0xab   : > { %p2807_p12 = pneg %p2806_p11  ;;  %p2813_p5 = por %p2812_p4, %p2811_p10 }
  0xad   : > { %p2814_p3 = pnand %p2813_p5, %p2807_p12 }
  0xaf   : > { %2817 = shalt.err (!%p2814_p3)
}
  0xb0   : > { %2529 = dma.hbm_to_vmem [thread:$0]  (!%p3133_p9), %s3256_s12, 384, %s547_s18, %s3151_s20, %s3696_s15, %s3696_s15, %s3695_s14  }
  0xb1   : > { %s3707_s17 = sand.u32 1, %s2930_s21   ;;  %s2818_s13 = scalar_lea.hbm %s3249_s9, 256 }
  0xb2   : > { %s557_s25 = scalar_lea.sflag [#allocation9], %s3707_s17  ;;  %p2819_p7 = scmp.ne.s32.totalorder %s3249_s9, %s2818_s13 }
  0xb3   : > { %s2823_s11 = scalar_lea.hbm %s3632_s3, 512  ;;  %p2824_p1 = scmp.lt.s32.totalorder %s3249_s9, %s3632_s3 }
  0xb4   : > { %p2821_p2 = pnand %p2819_p7, %p3157_p13  ;;  %p2825_p6 = scmp.lt.s32.totalorder %s2823_s11, %s2818_s13 }
  0xb6   : > { %p2822_p0 = pneg %p2821_p2  ;;  %p2826_p8 = por %p2825_p6, %p2824_p1 }
  0xb8   : > { %p2827_p11 = pnand %p2826_p8, %p2822_p0 }
  0xba   : > { %2830 = shalt.err (!%p2827_p11)
}
  0xbb   : > { %s2831_s12 = scalar_lea.vmem %s3258_s28, 256  ;;  %s2941_s20 = smov [#allocation8]  }
  0xbc   : > { %p2832_p12 = scmp.ne.s32.totalorder %s3258_s28, %s2831_s12  ;;  %s2836_s18 = sshll.u32 %s2941_s20, 4  ;;  %s2837_s18 = int_to_ptr.vmem [resolvable:$false] %s2836_s18 }
  0xbd   : > { %s2838_s30 = scalar_lea.vmem %s2837_s18, 512  ;;  %p2839_p5 = scmp.lt.s32.totalorder %s3258_s28, %s2837_s18 }
  0xbe   : > { %p2834_p10 = pnand %p2832_p12, %p3157_p13  ;;  %p2840_p3 = scmp.lt.s32.totalorder %s2838_s30, %s2831_s12 }
  0xc0   : > { %p2835_p4 = pneg %p2834_p10  ;;  %p2841_p7 = por %p2840_p3, %p2839_p5 }
  0xc2   : > { %p2842_p2 = pnand %p2841_p7, %p2835_p4 }
  0xc4   : > { %2845 = shalt.err (!%p2842_p2)
}
  0xc5   : > { %2532 = dma.hbm_to_vmem [thread:$0]  (!%p3133_p9), %s3249_s9, 256, %s3258_s28, %s557_s25, %s3696_s15, %s3696_s15, %s3695_s14  }
  0xc6   : > { %p3708_p13 = scmp.ne.s32.totalorder %s3684_s26, 0 }
  0xc7   : > { %s3310_s23 = sand.u32 (!%p3708_p13), 1, %s2922_s19   ;;  %p3709_p0 = scmp.ne.s32.totalorder (!%p3708_p13), %s3681_s24, 0 }
  0xc8   : > { %585 = sbr.rel (%p3708_p13) target bundleno = 2444 (0x98c), region = 80  ;;  %s3313_s1 = sshll.u32 (!%p3708_p13), %s3310_s23, 4 }
  0xc9   : > { %s588_s29 = scalar_lea.sflag (!%p3708_p13), [#allocation3], %s3310_s23  ;;  %s591_s27 = scalar_lea.vmem (!%p3708_p13), [#allocation2], %s3313_s1 }
  0xcd   : > { %2889 = dma.done.wait (%p3709_p0), %s588_s29, 256  }
  0xce   : > { %2891 = vsyncadd (%p3709_p0), %s588_s29, 4294967040  ;;  %s596_s26 = sand.u32 1, %s3053_s22   ;;  %s2480_s14 = smul.u32 24, %s3310_s23 }
  0xcf   : > { %s597_s15 = scalar_lea.sflag [#allocation6], %s596_s26 }
  0xd0   : > { %s3323_s28 = scalar_lea.vmem [#allocation5], %s2480_s14 }
  0xd1   : > { %2893 = dma.done.wait (%p3709_p0), %s597_s15, 768  }
  0xd2   : > { %2895 = vsyncadd (%p3709_p0), %s597_s15, 4294966528  ;;  %s3329_s9 = scalar_lea.vmem [#allocation7], %s2480_s14  ;;  %s615_s17 = scalar_lea.sflag [#allocation9], %s596_s26 }
  0xd3   : > { %s618_s25 = scalar_lea.vmem [#allocation8], %s3313_s1 }
  0xd4   : > { %2897 = dma.done.wait (%p3709_p0), %s615_s17, 256  }
  0xd5   : > { %2899 = vsyncadd (%p3709_p0), %s615_s17, 4294967040  ;;  %p3710_p9 = scmp.eq.s32.totalorder %s3053_s22, 0 }
  0xd7   : > { %2901 = dma.done.wait (%p3710_p9), [#allocation9], 512   ;;  %p3711_p1 = pmov %p3710_p9 }
  0xd9   : > { %2903 = vsyncadd (%p3711_p1), [#allocation9], 4294966784  ;;  %p3712_p6 = pmov %p3711_p1 }
  0xda   : > { %p3713_p8 = pmov %p3711_p1 }
  0xdb   : > { %2905 = dma.done.wait (%p3712_p6), [#allocation12], 1024  }
  0xdc   : > { %2907 = vsyncadd (%p3713_p8), [#allocation12], 4294966272  ;;  %p3714_p11 = pmov %p3711_p1 }
  0xdd   : > { %p3715_p12 = pmov %p3711_p1 }
  0xde   : > { %2909 = dma.done.wait (%p3714_p11), [#allocation15], 512  }
  0xdf   : > { %2911 = vsyncadd (%p3715_p12), [#allocation15], 4294966784  ;;  %v2942_v0 = vmov 0.0   ;;  %vm2943_vm0 = vmmov 0   ;;  %v707_v1 = vld [vmem:[#allocation10 + $0x18] sm:$0xff]  ;;  %v706_v3 = vld [vmem:[#allocation10 + $0x10] sm:$0xff]  ;;  %v1009_v58 = vlaneseq }
  0xe0   : > { %2359 = vmatprep.subr.mxu1 %v2942_v0  ;;  %2367 = vmatprep.mubr.msk.f32.mxu1 %vm2943_vm0, %v2942_v0  ;;  %v803_v2 = vld [vmem:[#allocation11 + $0x18] sm:$0xff]  ;;  %v802_v4 = vld [vmem:[#allocation11 + $0x10] sm:$0xff]  ;;  %v705_v5 = vld [vmem:[#allocation10 + $0x8] sm:$0xff]  ;;  %vm715_vm1 = vcmask 261120   ;;  %s2944_s11 = smov 120   ;;  %vm1014_vm2 = vcmask 64512  }
  0xe1   : > { %2348 = vmatprep.subr.mxu0 %v707_v1  ;;  %2360 = vmatpush3.msra.mxu1 %v803_v2  ;;  %v801_v6 = vld [vmem:[#allocation11 + $0x8] sm:$0xff]  ;;  %v704_v7 = vld [vmem:[#allocation10] sm:$0xff]  ;;  %v906_v14 = vld [vmem:[#allocation13 + $0x18] sm:$0xff]  ;;  %s2945_s7 = smov 112   ;;  %p699_p10 = scmp.lt.s32.totalorder %s3053_s22, 1  ;;  %v1010_v60 = vshrl.u32 %v1009_v58, 7 }
  0xe2   : > { %2349 = vmatpush3.msra.mxu0 %v707_v1  ;;  %2361 = vmatprep.subr.mxu1 %v2942_v0  ;;  %v800_v8 = vld [vmem:[#allocation11] sm:$0xff]  ;;  %v703_v11 = vld [vmem:[%s591_s27 + $0x8] sm:$0xff]  ;;  %v799_v13 = vld [vmem:[%s3323_s28 + $0x10] sm:$0xff]  ;;  %vm1105_vm4 = vcmask 195584   ;;  %s2947_s26 = smov 8   ;;  %s2948_s14 = smov 16  }
  0xe3   : > { %2350 = vmatprep.subr.mxu0 %v706_v3  ;;  %2362 = vmatpush3.msra.mxu1 %v802_v4  ;;  %v702_v9 = vld [vmem:[%s591_s27] sm:$0xff]  ;;  %v798_v12 = vld [vmem:[%s3323_s28 + $0x8] sm:$0xff]  ;;  %v900_v18 = vld [vmem:[%s3329_s9] sm:$0xff]  ;;  %s700_s20 = scalar_select %p699_p10, %s3053_s22, 1  ;;  %v1011_v61 = vsub.s32 0, %v1010_v60  ;;  %vm1859_vm5 = vcmask 130048  }
  0xe4   : > { %2351 = vmatpush3.msra.mxu0 %v706_v3  ;;  %2363 = vmatprep.subr.mxu1 %v2942_v0  ;;  %v797_v10 = vld [vmem:[%s3323_s28] sm:$0xff]  ;;  %v905_v15 = vld [vmem:[#allocation13 + $0x10] sm:$0xff]  ;;  %v904_v16 = vld [vmem:[#allocation13 + $0x8] sm:$0xff]  ;;  %s2946_s27 = smov 104   ;;  %s2949_s15 = smov 24  }
  0xe5   : > { %2352 = vmatprep.subr.mxu0 %v705_v5  ;;  %2364 = vmatpush3.msra.mxu1 %v801_v6  ;;  %v903_v17 = vld [vmem:[#allocation13] sm:$0xff]  ;;  %v901_v19 = vld [vmem:[%s3329_s9 + $0x8] sm:$0xff]  ;;  %s701_s29 = scalar_lea.vmem %s3633_s4, %s700_s20  ;;  %s3716_s17 = sld [smem:[#allocation36_spill]] }
  0xe6   : > { %2353 = vmatpush3.msra.mxu0 %v705_v5  ;;  %2365 = vmatprep.subr.mxu1 %v2942_v0  ;;  %v902_v20 = vld [vmem:[%s3329_s9 + $0x10] sm:$0xff]  ;;  %s3717_s13 = sld [smem:[#allocation37_spill]]  ;;  %s2281_s16 = sshll.u32 %s3053_s22, 8 }
  0xe7   : > { %2354 = vmatprep.subr.mxu0 %v704_v7  ;;  %2366 = vmatpush3.msra.mxu1 %v800_v8  ;;  %v2233_v21 = vld [vmem:[%s3637_s8] ss:$0 sm:$0xff]  ;;  %s698_s12 = scalar_lea.vmem [#allocation16], %s3313_s1  ;;  %s2950_s1 = smov [#allocation16]  }
  0xe8   : > { %2355 = vmatpush3.msra.mxu0 %v704_v7  ;;  %2356 = vmatprep.mubr.msk.f32.mxu0 %vm715_vm1, %v702_v9  ;;  %v2230_v24 = vld [vmem:[%s3635_s6] ss:$0 sm:$0xff]  ;;  %s2021_s20 = sshll.u32 %s698_s12, 4  ;;  %s3584_s20 = int_to_ptr.vmem [resolvable:$true] %s2021_s20 }
  0xe9   : > { %2368 = vmatmul.mubr.msk.f32.vlgmr.msra.gmra.mxu1 %vm715_vm1, %v797_v10  ;;  %2357 = vmatmul.mubr.msk.f32.vlgmr.msra.gmra.mxu0 %vm715_vm1, %v703_v11  ;;  %v2237_v51 = vld [vmem:[%s3639_s10] ss:$0 sm:$0xff]  ;;  %s2846_s22 = scalar_lea.vmem %s3584_s20, 256 }
  0xea   : > { %2370 = vmatprep.mubr.msk.f32.mxu1 %vm2943_vm0, %v2942_v0  ;;  %2376 = vmatprep.subr.mxu0 %v2942_v0  ;;  %v1003_v59 = vld [vmem:[%s701_s29] sm:$0x1]  ;;  %s3720_s29 = sld [smem:[#allocation39_spill]]  ;;  %p2847_p4 = scmp.ne.s32.totalorder %s3584_s20, %s2846_s22 }
  0xeb   : > { %2384 = vmatprep.mubr.msk.f32.mxu0 %vm2943_vm0, %v2942_v0  ;;  %2377 = vmatpush3.msra.mxu0 %v906_v14  ;;  %vm1004_vm3 = vcmp.gt.f32.partialorder %v1003_v59, 0.5 }
  0xec   : > { %2378 = vmatprep.subr.mxu0 %v2942_v0  ;;  %v1005_v62 = vsel %vm1004_vm3, -1e+30, %v2942_v0 }
  0xed   : > { %2371 = vmatmul.mubr.msk.f32.gmra.mxu1 %vm715_vm1, %v798_v12  ;;  %2379 = vmatpush3.msra.mxu0 %v905_v15  ;;  %v3475_v63 = vrot.slane %v1005_v62, %v1011_v61 }
  0xee   : > { %2373 = vmatprep.mubr.msk.f32.mxu1 %vm2943_vm0, %v2942_v0  ;;  %2380 = vmatprep.subr.mxu0 %v2942_v0 }
  0xef   : > { %2381 = vmatpush3.msra.mxu0 %v904_v16 }
  0xf0   : > { %2382 = vmatprep.subr.mxu0 %v2942_v0 }
  0xf1   : > { %2374 = vmatmul.mubr.msk.f32.gmra.mxu1 %vm715_vm1, %v799_v13  ;;  %2383 = vmatpush3.msra.mxu0 %v903_v17 }
  0xf2   : > { %2385 = vmatmul.mubr.msk.f32.vlgmr.msra.gmra.mxu0 %vm715_vm1, %v900_v18 }
  0xf3   : > { %2387 = vmatprep.mubr.msk.f32.mxu0 %vm2943_vm0, %v2942_v0 }
  0xf6   : > { %2388 = vmatmul.mubr.msk.f32.gmra.mxu0 %vm715_vm1, %v901_v19 }
  0xf7   : > { %2390 = vmatprep.mubr.msk.f32.mxu0 %vm2943_vm0, %v2942_v0 }
  0xfa   : > { %2391 = vmatmul.mubr.msk.f32.gmra.mxu0 %vm715_vm1, %v902_v20 }
 0x1a9   : > { %v886_v22 = vpop.f32.mrf.mxu1  ;;  %v2358_v23 = vpop.f32.mrf.mxu0 }
 0x1aa   : > { %v3392_v25 = vadd.f32 %v2233_v21, %v886_v22  ;;  %v794_v29 = vadd.f32 %v2358_v23, %v2230_v24 }
 0x1ab   : > { %v2369_v26 = vpop.f32.mrf.mxu1  ;;  %v788_v27 = vpop.f32.mrf.mxu0 }
 0x1ac   : > { %1213 = vrot.lane.b32.xlu1 %v3392_v25, %s2944_s11  ;;  %v789_v28 = vadd.f32 %v2230_v24, %v788_v27  ;;  %v3402_v33 = vmul.f32 0.35355338, %v794_v29 }
 0x1ad   : > { %v891_v30 = vpop.f32.mrf.mxu1 }
 0x1ae   : > { %v3396_v31 = vmul.f32 0.35355338, %v789_v28  ;;  %v3406_v37 = vadd.f32 %v2233_v21, %v891_v30 }
 0x1af   : > { %v2372_v32 = vpop.f32.mrf.mxu1 }
 0x1b0   : > { %1209 = vrot.lane.b32.xlu1 %v3396_v31, %s2944_s11  ;;  %2399 = vmatprep.mubr.msk.f32.mxu1 %vm1014_vm2, %v3396_v31 }
 0x1b1   : > { %v896_v34 = vpop.f32.mrf.mxu1 }
 0x1b2   : > { %v3404_v35 = vadd.f32 %v2233_v21, %v896_v34  ;;  %v989_v38 = vpop.f32.mrf.mxu0 }
 0x1b3   : > { %v2375_v36 = vpop.f32.mrf.mxu1  ;;  %v3461_v57 = vadd.f32 %v2237_v51, %v989_v38 }
 0x1b4   : > { %1217 = vrot.lane.b32.xlu0 %v3404_v35, %s2944_s11  ;;  %2393 = vmatprep.subr.msk.mxu1 %vm1014_vm2, %v3404_v35  ;;  %v2386_v39 = vpop.f32.mrf.mxu0 }
 0x1b5   : > { %2394 = vmatpush3.xpose.msk.msra.mxu1 %vm1014_vm2, %v3404_v35  ;;  %1211 = vrot.lane.b32.xlu1 %v3402_v33, %s2944_s11 }
 0x1b6   : > { %2395 = vmatprep.subr.msk.mxu1 %vm1014_vm2, %v3406_v37  ;;  %v994_v50 = vpop.f32.mrf.mxu0 }
 0x1b7   : > { %v3457_v54 = vadd.f32 %v2237_v51, %v994_v50 }
 0x1b8   : > { %1215 = vrot.lane.b32.xlu0 %v3406_v37, %s2944_s11  ;;  %v2389_v52 = vpop.f32.mrf.mxu0 }
 0x1b9   : > { %2396 = vmatpush3.xpose.msk.msra.mxu1 %vm1014_vm2, %v3406_v37  ;;  %1423 = vrot.lane.b32.xlu1 %v3392_v25, %s2945_s7 }
 0x1ba   : > { %2397 = vmatprep.subr.msk.mxu1 %vm1014_vm2, %v3392_v25  ;;  %v999_v53 = vpop.f32.mrf.mxu0 }
 0x1bb   : > { %v3459_v55 = vadd.f32 %v2237_v51, %v999_v53 }
 0x1bc   : > { %1427 = vrot.lane.b32.xlu0 %v3404_v35, %s2945_s7  ;;  %v2392_v56 = vpop.f32.mrf.mxu0 }
 0x1bd   : > { %2398 = vmatpush3.xpose.msk.msra.mxu1 %vm1014_vm2, %v3392_v25  ;;  %1421 = vrot.lane.b32.xlu1 %v3402_v33, %s2945_s7 }
 0x1be   : > { %2402 = vmatprep.subr.mxu1 %v3459_v55 }
 0x1c0   : > { %1425 = vrot.lane.b32.xlu0 %v3406_v37, %s2945_s7  ;;  %2400 = vmatmul.mubr.msk.f32.vlgmr.msra.gmra.mxu1 %vm1014_vm2, %v3402_v33 }
 0x1c1   : > { %2403 = vmatpush3.msra.mxu1 %v3459_v55 }
 0x1c2   : > { %2404 = vmatprep.subr.mxu1 %v3457_v54 }
 0x1c3   : > { %2405 = vmatpush3.msra.mxu1 %v3457_v54 }
 0x1c4   : > { %1419 = vrot.lane.b32.xlu0 %v3396_v31, %s2945_s7  ;;  %2406 = vmatprep.subr.mxu1 %v3461_v57 }
 0x1c5   : > { %2407 = vmatpush3.msra.mxu1 %v3461_v57 }
 0x21e   : > { %v1214_v40 = vpop.permute.xlu1 %1213 }
 0x222   : > { %v1210_v41 = vpop.permute.xlu1 %1209 }
 0x223   : > { %2417 = vmatprep.mubr.msk.f32.mxu0 %vm1014_vm2, %v1210_v41 }
 0x226   : > { %v1218_v42 = vpop.permute.xlu0 %1217 }
 0x227   : > { %2411 = vmatprep.subr.msk.mxu0 %vm1014_vm2, %v1218_v42  ;;  %v1212_v45 = vpop.permute.xlu1 %1211 }
 0x228   : > { %2412 = vmatpush3.xpose.msk.msra.mxu0 %vm1014_vm2, %v1218_v42 }
 0x22a   : > { %v1216_v43 = vpop.permute.xlu0 %1215 }
 0x22b   : > { %2413 = vmatprep.subr.msk.mxu0 %vm1014_vm2, %v1216_v43  ;;  %v1424_v48 = vpop.permute.xlu1 %1423 }
 0x22c   : > { %2414 = vmatpush3.xpose.msk.msra.mxu0 %vm1014_vm2, %v1216_v43 }
 0x22d   : > { %2415 = vmatprep.subr.msk.mxu0 %vm1014_vm2, %v1214_v40 }
 0x22e   : > { %v1428_v44 = vpop.permute.xlu0 %1427 }
 0x22f   : > { %v1422_v49 = vpop.permute.xlu1 %1421 }
 0x230   : > { %2416 = vmatpush3.xpose.msk.msra.mxu0 %vm1014_vm2, %v1214_v40 }
 0x231   : > { %2429 = vmatprep.subr.msk.mxu0 %vm1014_vm2, %v1428_v44 }
 0x232   : > { %v1426_v46 = vpop.permute.xlu0 %1425 }
 0x233   : > { %2418 = vmatmul.mubr.msk.f32.vlgmr.msra.gmra.mxu0 %vm1014_vm2, %v1212_v45 }
 0x234   : > { %2430 = vmatpush3.xpose.msk.msra.mxu0 %vm1014_vm2, %v1428_v44 }
 0x235   : > { %2431 = vmatprep.subr.msk.mxu0 %vm1014_vm2, %v1426_v46 }
 0x236   : > { %v1420_v47 = vpop.permute.xlu0 %1419 }
 0x237   : > { %2435 = vmatprep.mubr.msk.f32.mxu0 %vm1014_vm2, %v1420_v47 }
 0x238   : > { %2432 = vmatpush3.xpose.msk.msra.mxu0 %vm1014_vm2, %v1426_v46 }
 0x239   : > { %2433 = vmatprep.subr.msk.mxu0 %vm1014_vm2, %v1424_v48 }
 0x23c   : > { %2434 = vmatpush3.xpose.msk.msra.mxu0 %vm1014_vm2, %v1424_v48 }
 0x23f   : > { %2436 = vmatmul.mubr.msk.f32.vlgmr.msra.gmra.mxu0 %vm1014_vm2, %v1422_v49 }
 0x280   : > { %v2401_v1 = vpop.f32.mrf.mxu1 }
 0x281   : > { %v1102_v2 = vadd.f32 %v2401_v1, %v3475_v63 }
 0x282   : > { %v1096_v3 = vpop.f32.mrf.mxu1 }
 0x283   : > { %v1097_v4 = vadd.f32 %v1096_v3, %v3475_v63  ;;  %v1109_v5 = vsel %vm1105_vm4, %v1102_v2, -inf }
 0x284   : > { %1110 = vmax.xlane.f32.xlu1 %v1109_v5 }
 0x285   : > { %v1106_v6 = vsel %vm1105_vm4, %v1097_v4, -inf }
 0x286   : > { %1107 = vmax.xlane.f32.xlu0 %v1106_v6 }
 0x2f3   : > { %v2419_v7 = vpop.f32.mrf.mxu0 }
 0x2f4   : > { %v1301_v0 = vadd.f32 %v2419_v7, %v3475_v63 }
 0x2f5   : > { %v1295_v8 = vpop.f32.mrf.mxu0 }
 0x2f6   : > { %v1296_v9 = vadd.f32 %v1295_v8, %v3475_v63  ;;  %v1307_v11 = vsel %vm1105_vm4, %v1301_v0, -inf }
 0x2f8   : > { %v1304_v10 = vsel %vm1105_vm4, %v1296_v9, -inf }
 0x2f9   : > { %1305 = vmax.xlane.f32.xlu0 %v1304_v10 }
 0x2fd   : > { %1308 = vmax.xlane.f32.xlu0 %v1307_v11 }
 0x2ff   : > { %v2437_v12 = vpop.f32.mrf.mxu0 }
 0x300   : > { %v1511_v13 = vadd.f32 %v2437_v12, %v3475_v63 }
 0x301   : > { %v1505_v14 = vpop.f32.mrf.mxu0 }
 0x302   : > { %v1506_v15 = vadd.f32 %v1505_v14, %v3475_v63  ;;  %v1517_v16 = vsel %vm1105_vm4, %v1511_v13, -inf }
 0x303   : > { %1518 = vmax.xlane.f32.xlu0 %v1517_v16 }
 0x304   : > { %v1514_v17 = vsel %vm1105_vm4, %v1506_v15, -inf }
 0x305   : > { %1515 = vmax.xlane.f32.xlu1 %v1514_v17 }
 0x30d   : > { %v1111_v18 = vpop.xlane.xlu1 %1110 }
 0x30e   : > { %v1113_v19 = vsub.f32 %v1102_v2, %v1111_v18 }
 0x30f   : > { %v1108_v21 = vpop.xlane.xlu0 %1107 }
 0x310   : > { %v1116_v20 = vmul.f32 1.442695, %v1113_v19  ;;  %v1112_v22 = vsub.f32 %v1097_v4, %v1108_v21 }
 0x312   : > { %2594 = vpow2.f32 %v1116_v20  ;;  %v1114_v23 = vmul.f32 1.442695, %v1112_v22 }
 0x314   : > { %2596 = vpow2.f32 %v1114_v23 }
 0x316   : > { %1333 = vrot.lane.b32.xlu1 %v3459_v55, %s2944_s11 }
 0x319   : > { %1331 = vrot.lane.b32.xlu0 %v3457_v54, %s2944_s11 }
 0x31a   : > { %1329 = vrot.lane.b32.xlu1 %v3461_v57, %s2944_s11  ;;  %s3718_s11 = sld [smem:[#allocation38_spill]] }
 0x31d   : > { %1538 = vrot.lane.b32.xlu0 %v3457_v54, %s2945_s7 }
 0x31e   : > { %1540 = vrot.lane.b32.xlu1 %v3459_v55, %s2945_s7 }
 0x31f   : > { %v2595_v24 = vpop.eup %2594 }
 0x320   : > { %v1121_v26 = vsel %vm1105_vm4, %v2595_v24, 0.0 }
 0x321   : > { %v2597_v27 = vpop.eup %2596 }
 0x322   : > { %1536 = vrot.lane.b32.xlu1 %v3461_v57, %s2945_s7  ;;  %v1118_v28 = vsel %vm1105_vm4, %v2597_v27, 0.0  ;;  %s3719_s7 = sld [smem:[#allocation28_spill]] }
 0x328   : > { %p3721_p5 = scmp.ne.s32.totalorder %s3719_s7, 0 }
 0x32a   : > { %p2848_p3 = pnand %p2847_p4, %p3721_p5 }
 0x32c   : > { %p2849_p7 = pneg %p2848_p3 }
 0x33c   : > { %1122 = vadd.xlane.f32.xlu0 %v1121_v26 }
 0x346   : > { %1119 = vadd.xlane.f32.xlu1 %v1118_v28 }
 0x382   : > { %v1306_v29 = vpop.xlane.xlu0 %1305 }
 0x383   : > { %v1310_v30 = vsub.f32 %v1296_v9, %v1306_v29 }
 0x385   : > { %v1312_v32 = vmul.f32 1.442695, %v1310_v30 }
 0x386   : > { %v1309_v34 = vpop.xlane.xlu0 %1308 }
 0x387   : > { %2598 = vpow2.f32 %v1312_v32  ;;  %v1311_v36 = vsub.f32 %v1301_v0, %v1309_v34 }
 0x389   : > { %v1314_v38 = vmul.f32 1.442695, %v1311_v36 }
 0x38b   : > { %2600 = vpow2.f32 %v1314_v38 }
 0x38c   : > { %v1519_v39 = vpop.xlane.xlu0 %1518 }
 0x38d   : > { %v1521_v40 = vsub.f32 %v1511_v13, %v1519_v39 }
 0x38e   : > { %v1516_v41 = vpop.xlane.xlu1 %1515 }
 0x38f   : > { %v1524_v42 = vmul.f32 1.442695, %v1521_v40  ;;  %v1520_v43 = vsub.f32 %v1506_v15, %v1516_v41 }
 0x390   : > { %v1332_v58 = vpop.permute.xlu0 %1331 }
 0x391   : > { %2602 = vpow2.f32 %v1524_v42  ;;  %v1522_v44 = vmul.f32 1.442695, %v1520_v43 }
 0x392   : > { %v1334_v45 = vpop.permute.xlu1 %1333 }
 0x393   : > { %2604 = vpow2.f32 %v1522_v44  ;;  %2420 = vmatprep.subr.mxu1 %v1334_v45 }
 0x394   : > { %v2599_v46 = vpop.eup %2598  ;;  %v1539_v60 = vpop.permute.xlu0 %1538 }
 0x395   : > { %v1316_v47 = vsel %vm1105_vm4, %v2599_v46, 0.0 }
 0x396   : > { %1317 = vadd.xlane.f32.xlu1 %v1316_v47  ;;  %v1330_v56 = vpop.permute.xlu1 %1329 }
 0x398   : > { %v2601_v48 = vpop.eup %2600 }
 0x399   : > { %v1319_v49 = vsel %vm1105_vm4, %v2601_v48, 0.0 }
 0x39a   : > { %1320 = vadd.xlane.f32.xlu0 %v1319_v49  ;;  %v1541_v59 = vpop.permute.xlu1 %1540  ;;  %v1867_v49 = vld [vmem:[#allocation14 + $0x18] sm:$0xff] }
 0x39e   : > { %v2603_v50 = vpop.eup %2602  ;;  %v1537_v61 = vpop.permute.xlu1 %1536 }
 0x39f   : > { %v1529_v51 = vsel %vm1105_vm4, %v2603_v50, 0.0 }
 0x3a0   : > { %v2605_v52 = vpop.eup %2604  ;;  %1530 = vadd.xlane.f32.xlu0 %v1529_v51  ;;  %v1865_v51 = vld [vmem:[#allocation14 + $0x8] sm:$0xff] }
 0x3a1   : > { %v1526_v53 = vsel %vm1105_vm4, %v2605_v52, 0.0 }
 0x3a2   : > { %1527 = vadd.xlane.f32.xlu1 %v1526_v53 }
 0x3b3   : > { %1632 = vrot.lane.b32.xlu1 %v3406_v37, %s2946_s27 }
 0x3b6   : > { %1634 = vrot.lane.b32.xlu0 %v3404_v35, %s2946_s27 }
 0x3b7   : > { %1626 = vrot.lane.b32.xlu1 %v3396_v31, %s2946_s27 }
 0x3ba   : > { %1630 = vrot.lane.b32.xlu0 %v3392_v25, %s2946_s27 }
 0x3be   : > { %1628 = vrot.lane.b32.xlu0 %v3402_v33, %s2946_s27 }
 0x3c5   : > { %v1123_v62 = vpop.xlane.xlu0 %1122 }
 0x3c6   : > { %2606 = vrcp.f32 %v1123_v62 }
 0x3cf   : > { %v1120_v37 = vpop.xlane.xlu1 %1119 }
 0x3d0   : > { %2608 = vrcp.f32 %v1120_v37 }
 0x3d3   : > { %v2607_v1 = vpop.eup %2606 }
 0x3d4   : > { %v1127_v3 = vmul.f32 %v2607_v1, %v2595_v24 }
 0x3dd   : > { %v2609_v35 = vpop.eup %2608 }
 0x3de   : > { %v1126_v2 = vmul.f32 %v2609_v35, %v2597_v27 }
 0x3e0   : > { %2408 = vmatprep.mubr.msk.f32.mxu1 %vm1105_vm4, %v1126_v2 }
 0x3e1   : > { %2409 = vmatmul.mubr.msk.f32.vlgmr.msra.gmra.mxu1 %vm1105_vm4, %v1127_v3 }
 0x3e2   : > { %2421 = vmatpush3.msra.mxu1 %v1334_v45 }
 0x3e3   : > { %2422 = vmatprep.subr.mxu1 %v1332_v58 }
 0x3e4   : > { %2423 = vmatpush3.msra.mxu1 %v1332_v58 }
 0x3e5   : > { %2424 = vmatprep.subr.mxu1 %v1330_v56 }
 0x3e6   : > { %2425 = vmatpush3.msra.mxu1 %v1330_v56 }
 0x3e7   : > { %2438 = vmatprep.subr.mxu1 %v1541_v59 }
 0x41f   : > { %v1318_v25 = vpop.xlane.xlu1 %1317 }
 0x420   : > { %2610 = vrcp.f32 %v1318_v25 }
 0x423   : > { %v1321_v31 = vpop.xlane.xlu0 %1320 }
 0x424   : > { %2612 = vrcp.f32 %v1321_v31 }
 0x429   : > { %v1531_v33 = vpop.xlane.xlu0 %1530 }
 0x42a   : > { %2614 = vrcp.f32 %v1531_v33  ;;  %v2269_v33 = vld [vmem:[%s3716_s17] ss:$0 sm:$0xff] }
 0x42b   : > { %v1528_v4 = vpop.xlane.xlu1 %1527 }
 0x42c   : > { %2616 = vrcp.f32 %v1528_v4 }
 0x42d   : > { %v2611_v5 = vpop.eup %2610  ;;  %v1635_v11 = vpop.permute.xlu0 %1634 }
 0x42e   : > { %v1324_v6 = vmul.f32 %v2611_v5, %v2599_v46  ;;  %v1957_v5 = vld [vmem:[%s618_s25 + $0x8] sm:$0xff] }
 0x42f   : > { %v1633_v9 = vpop.permute.xlu1 %1632 }
 0x430   : > { %2426 = vmatprep.mubr.msk.f32.mxu1 %vm1105_vm4, %v1324_v6 }
 0x431   : > { %v2613_v7 = vpop.eup %2612  ;;  %v1631_v15 = vpop.permute.xlu0 %1630 }
 0x432   : > { %v1325_v8 = vmul.f32 %v2613_v7, %v2601_v48 }
 0x433   : > { %v1627_v14 = vpop.permute.xlu1 %1626 }
 0x434   : > { %2427 = vmatmul.mubr.msk.f32.vlgmr.msra.gmra.mxu1 %vm1105_vm4, %v1325_v8  ;;  %v1956_v8 = vld [vmem:[%s618_s25] sm:$0xff] }
 0x435   : > { %2439 = vmatpush3.msra.mxu1 %v1541_v59  ;;  %v1629_v16 = vpop.permute.xlu0 %1628 }
 0x436   : > { %2440 = vmatprep.subr.mxu1 %v1539_v60 }
 0x437   : > { %2441 = vmatpush3.msra.mxu1 %v1539_v60  ;;  %v2615_v0 = vpop.eup %2614 }
 0x438   : > { %2442 = vmatprep.subr.mxu1 %v1537_v61  ;;  %v1535_v13 = vmul.f32 %v2615_v0, %v2603_v50  ;;  %v1866_v50 = vld [vmem:[#allocation14 + $0x10] sm:$0xff] }
 0x439   : > { %v2617_v10 = vpop.eup %2616  ;;  %2443 = vmatpush3.msra.mxu1 %v1537_v61 }
 0x43a   : > { %2447 = vmatprep.subr.msk.mxu1 %vm1014_vm2, %v1635_v11  ;;  %v1534_v12 = vmul.f32 %v2617_v10, %v2605_v52  ;;  %v1864_v52 = vld [vmem:[#allocation14] sm:$0xff] }
 0x43c   : > { %2444 = vmatprep.mubr.msk.f32.mxu1 %vm1105_vm4, %v1534_v12 }
 0x43d   : > { %2445 = vmatmul.mubr.msk.f32.vlgmr.msra.gmra.mxu1 %vm1105_vm4, %v1535_v13 }
 0x43e   : > { %2448 = vmatpush3.xpose.msk.msra.mxu1 %vm1014_vm2, %v1635_v11  ;;  %2453 = vmatprep.mubr.msk.f32.mxu1 %vm1014_vm2, %v1627_v14 }
 0x43f   : > { %2449 = vmatprep.subr.msk.mxu1 %vm1014_vm2, %v1633_v9 }
 0x442   : > { %2450 = vmatpush3.xpose.msk.msra.mxu1 %vm1014_vm2, %v1633_v9 }
 0x443   : > { %2451 = vmatprep.subr.msk.mxu1 %vm1014_vm2, %v1631_v15 }
 0x446   : > { %2452 = vmatpush3.xpose.msk.msra.mxu1 %vm1014_vm2, %v1631_v15 }
 0x449   : > { %2454 = vmatmul.mubr.msk.f32.vlgmr.msra.gmra.mxu1 %vm1014_vm2, %v1629_v16 }
 0x4a1   : > { %v3531_v17 = vpop.f32.mrf.mxu1 }
 0x4a3   : > { %v3533_v18 = vpop.f32.mrf.mxu1 }
 0x4f4   : > { %v2428_v19 = vpop.f32.mrf.mxu1 }
 0x4f6   : > { %v1410_v20 = vpop.f32.mrf.mxu1 }
 0x4fd   : > { %v2446_v21 = vpop.f32.mrf.mxu1 }
 0x4ff   : > { %v1617_v22 = vpop.f32.mrf.mxu1 }
 0x509   : > { %v2455_v23 = vpop.f32.mrf.mxu1 }
 0x50a   : > { %v1718_v24 = vadd.f32 %v2455_v23, %v3475_v63 }
 0x50b   : > { %v1712_v26 = vpop.f32.mrf.mxu1 }
 0x50c   : > { %v1713_v27 = vadd.f32 %v1712_v26, %v3475_v63  ;;  %v1724_v28 = vsel %vm1105_vm4, %v1718_v24, -inf }
 0x50d   : > { %1725 = vmax.xlane.f32.xlu0 %v1724_v28 }
 0x50e   : > { %v1721_v29 = vsel %vm1105_vm4, %v1713_v27, -inf }
 0x50f   : > { %1722 = vmax.xlane.f32.xlu1 %v1721_v29 }
 0x596   : > { %v1726_v30 = vpop.xlane.xlu0 %1725 }
 0x597   : > { %v1728_v32 = vsub.f32 %v1718_v24, %v1726_v30 }
 0x598   : > { %v1723_v34 = vpop.xlane.xlu1 %1722 }
 0x599   : > { %v1731_v36 = vmul.f32 1.442695, %v1728_v32  ;;  %v1727_v38 = vsub.f32 %v1713_v27, %v1723_v34  ;;  %v2272_v32 = vld [vmem:[%s3717_s13] ss:$0 sm:$0xff] }
 0x59b   : > { %2618 = vpow2.f32 %v1731_v36  ;;  %v1729_v39 = vmul.f32 1.442695, %v1727_v38  ;;  %v2273_v36 = vld [vmem:[%s3718_s11] ss:$0 sm:$0xff] }
 0x59d   : > { %2620 = vpow2.f32 %v1729_v39 }
 0x5a8   : > { %v2619_v40 = vpop.eup %2618 }
 0x5a9   : > { %v1736_v41 = vsel %vm1105_vm4, %v2619_v40, 0.0 }
 0x5aa   : > { %v2621_v42 = vpop.eup %2620  ;;  %1737 = vadd.xlane.f32.xlu1 %v1736_v41 }
 0x5ab   : > { %v1733_v63 = vsel %vm1105_vm4, %v2621_v42, 0.0 }
 0x5ac   : > { %1734 = vadd.xlane.f32.xlu0 %v1733_v63 }
 0x5bb   : > { %1745 = vrot.lane.b32.xlu1 %v3457_v54, %s2946_s27 }
 0x5bf   : > { %1743 = vrot.lane.b32.xlu1 %v3461_v57, %s2946_s27 }
 0x5c2   : > { %1747 = vrot.lane.b32.xlu0 %v3459_v55, %s2946_s27  ;;  %s3582_s27 = scalar_lea.hbm %s3720_s29, %s2281_s16 }
 0x5c3   : > { %1837 = vrot.lane.b32.xlu1 %v2428_v19, %s2947_s26 }
 0x5c6   : > { %1835 = vrot.lane.b32.xlu0 %v1410_v20, %s2947_s26 }
 0x5c7   : > { %1845 = vrot.lane.b32.xlu1 %v2446_v21, %s2948_s14 }
 0x5ca   : > { %1843 = vrot.lane.b32.xlu0 %v1617_v22, %s2948_s14  ;;  %s2008_s14 = scalar_lea.sflag [#allocation4], %s3310_s23 }
 0x633   : > { %v1738_v43 = vpop.xlane.xlu1 %1737 }
 0x634   : > { %2622 = vrcp.f32 %v1738_v43 }
 0x635   : > { %v1735_v44 = vpop.xlane.xlu0 %1734 }
 0x636   : > { %2624 = vrcp.f32 %v1735_v44 }
 0x637   : > { %v1746_v45 = vpop.permute.xlu1 %1745 }
 0x639   : > { %v1748_v54 = vpop.permute.xlu0 %1747 }
 0x63a   : > { %2456 = vmatprep.subr.mxu0 %v1748_v54 }
 0x63b   : > { %2457 = vmatpush3.msra.mxu0 %v1748_v54  ;;  %v1744_v57 = vpop.permute.xlu1 %1743 }
 0x63c   : > { %2458 = vmatprep.subr.mxu0 %v1746_v45 }
 0x63d   : > { %2459 = vmatpush3.msra.mxu0 %v1746_v45  ;;  %v1836_v59 = vpop.permute.xlu0 %1835 }
 0x63e   : > { %2460 = vmatprep.subr.mxu0 %v1744_v57  ;;  %v1857_v62 = vsel %vm1014_vm2, %v3533_v18, %v1836_v59 }
 0x63f   : > { %2461 = vmatpush3.msra.mxu0 %v1744_v57  ;;  %v1838_v58 = vpop.permute.xlu1 %1837 }
 0x640   : > { %2465 = vmatprep.subr.mxu0 %v1867_v49  ;;  %v1858_v1 = vsel %vm1014_vm2, %v3531_v17, %v1838_v58 }
 0x641   : > { %v2623_v55 = vpop.eup %2622  ;;  %v1844_v61 = vpop.permute.xlu0 %1843 }
 0x642   : > { %v1742_v48 = vmul.f32 %v2623_v55, %v2619_v40  ;;  %v1860_v35 = vsel %vm1859_vm5, %v1857_v62, %v1844_v61 }
 0x643   : > { %v2625_v46 = vpop.eup %2624  ;;  %v1846_v60 = vpop.permute.xlu1 %1845 }
 0x644   : > { %v1741_v47 = vmul.f32 %v2625_v46, %v2621_v42  ;;  %v1861_v3 = vsel %vm1859_vm5, %v1858_v1, %v1846_v60 }
 0x646   : > { %2462 = vmatprep.mubr.msk.f32.mxu0 %vm1105_vm4, %v1741_v47 }
 0x647   : > { %2463 = vmatmul.mubr.msk.f32.vlgmr.msra.gmra.mxu0 %vm1105_vm4, %v1742_v48 }
 0x648   : > { %2466 = vmatpush3.msra.mxu0 %v1867_v49 }
 0x649   : > { %2467 = vmatprep.subr.mxu0 %v1866_v50 }
 0x64a   : > { %2468 = vmatpush3.msra.mxu0 %v1866_v50 }
 0x64b   : > { %2469 = vmatprep.subr.mxu0 %v1865_v51 }
 0x64c   : > { %2470 = vmatpush3.msra.mxu0 %v1865_v51 }
 0x64d   : > { %2471 = vmatprep.subr.mxu0 %v1864_v52 }
 0x64e   : > { %2472 = vmatpush3.msra.mxu0 %v1864_v52 }
 0x707   : > { %v2464_v53 = vpop.f32.mrf.mxu0 }
 0x708   : > { %1853 = vrot.lane.b32.xlu1 %v2464_v53, %s2949_s15 }
 0x709   : > { %v1824_v56 = vpop.f32.mrf.mxu0 }
 0x70a   : > { %1851 = vrot.lane.b32.xlu0 %v1824_v56, %s2949_s15  ;;  %s2850_s15 = sshll.u32 %s2950_s1, 4  ;;  %s2851_s15 = int_to_ptr.vmem [resolvable:$false] %s2850_s15 }
 0x70b   : > { %s2852_s28 = scalar_lea.vmem %s2851_s15, 512  ;;  %p2853_p2 = scmp.lt.s32.totalorder %s3584_s20, %s2851_s15 }
 0x70c   : > { %p2854_p13 = scmp.lt.s32.totalorder %s2852_s28, %s2846_s22 }
 0x70e   : > { %p2855_p0 = por %p2854_p13, %p2853_p2 }
 0x710   : > { %p2856_p9 = pnand %p2855_p0, %p2849_p7 }
 0x77a   : > { %v1854_v37 = vpop.permute.xlu1 %1853 }
 0x77b   : > { %v1863_v31 = vsel %vm1105_vm4, %v1861_v3, %v1854_v37 }
 0x77c   : > { %v1852_v2 = vpop.permute.xlu0 %1851 }
 0x77d   : > { %v1862_v25 = vsel %vm1105_vm4, %v1860_v35, %v1852_v2 }
 0x77e   : > { %2473 = vmatprep.mubr.msk.f32.mxu0 %vm715_vm1, %v1862_v25 }
 0x77f   : > { %2474 = vmatmul.mubr.msk.f32.vlgmr.msra.gmra.mxu0 %vm715_vm1, %v1863_v31 }
 0x83f   : > { %v2475_v4 = vpop.f32.mrf.mxu0 }
 0x840   : > { %v1953_v6 = vadd.f32 %v2475_v4, %v2269_v33 }
 0x841   : > { %v1947_v7 = vpop.f32.mrf.mxu0 }
 0x842   : > { %v1948_v9 = vadd.f32 %v2269_v33, %v1947_v7  ;;  %v1959_v0 = vadd.f32 %v1957_v5, %v1953_v6 }
 0x844   : > { %v1963_v10 = vsel %vm715_vm1, %v1959_v0, 0.0  ;;  %v1958_v11 = vadd.f32 %v1956_v8, %v1948_v9 }
 0x845   : > { %1964 = vadd.xlane.f32.xlu1 %v1963_v10 }
 0x846   : > { %v1960_v12 = vsel %vm715_vm1, %v1958_v11, 0.0 }
 0x847   : > { %1961 = vadd.xlane.f32.xlu0 %v1960_v12 }
 0x8ce   : > { %v1965_v13 = vpop.xlane.xlu1 %1964 }
 0x8cf   : > { %v1968_v14 = vmul.f32 0.03125, %v1965_v13 }
 0x8d0   : > { %v1962_v15 = vpop.xlane.xlu0 %1961 }
 0x8d1   : > { %v1967_v16 = vmul.f32 0.03125, %v1962_v15  ;;  %v1970_v17 = vsub.f32 %v1959_v0, %v1968_v14 }
 0x8d3   : > { %v1969_v18 = vsub.f32 %v1958_v11, %v1967_v16  ;;  %v1972_v21 = vmul.f32 %v1970_v17, %v1970_v17 }
 0x8d5   : > { %v1971_v19 = vmul.f32 %v1969_v18, %v1969_v18  ;;  %v1976_v22 = vsel %vm715_vm1, %v1972_v21, 0.0 }
 0x8d7   : > { %v1973_v20 = vsel %vm715_vm1, %v1971_v19, 0.0 }
 0x8d8   : > { %1974 = vadd.xlane.f32.xlu0 %v1973_v20 }
 0x8dc   : > { %1977 = vadd.xlane.f32.xlu0 %v1976_v22 }
 0x961   : > { %v1975_v23 = vpop.xlane.xlu0 %1974 }
 0x962   : > { %v1979_v24 = vmul.f32 0.03125, %v1975_v23 }
 0x964   : > { %v1981_v26 = vadd.f32 1e-05, %v1979_v24 }
 0x965   : > { %v1978_v27 = vpop.xlane.xlu0 %1977 }
 0x966   : > { %2626 = vrsqrt.f32 %v1981_v26  ;;  %v1980_v28 = vmul.f32 0.03125, %v1978_v27 }
 0x968   : > { %v1982_v29 = vadd.f32 1e-05, %v1980_v28 }
 0x96a   : > { %2628 = vrsqrt.f32 %v1982_v29 }
 0x973   : > { %v2627_v30 = vpop.eup %2626 }
 0x974   : > { %v1985_v34 = vmul.f32 %v2627_v30, %v1969_v18 }
 0x976   : > { %v1994_v38 = vmul.f32 %v2272_v32, %v1985_v34 }
 0x977   : > { %v2629_v39 = vpop.eup %2628 }
 0x978   : > { %v2003_v40 = vadd.f32 %v2273_v36, %v1994_v38  ;;  %v1986_v41 = vmul.f32 %v2629_v39, %v1970_v17 }
 0x97a   : > { %v1995_v42 = vmul.f32 %v2272_v32, %v1986_v41  ;;  %2005 = vst.msk [vmem:[%s698_s12] sm:$0xff] %vm715_vm1, %v2003_v40 }
 0x97c   : > { %v2004_v63 = vadd.f32 %v2273_v36, %v1995_v42 }
 0x97e   : > { %2006 = vst.msk [vmem:[%s698_s12 + $0x8] sm:$0xff] %vm715_vm1, %v2004_v63 }
 0x97f   : > { %2859 = shalt.err (!%p2856_p9)
}
 0x980   : > { %s2860_s9 = scalar_lea.hbm %s3582_s27, 256  ;;  %s2864_s24 = scalar_lea.hbm %s3720_s29, 512 }
 0x981   : > { %p2861_p1 = scmp.ne.s32.totalorder %s3582_s27, %s2860_s9  ;;  %p2865_p11 = scmp.lt.s32.totalorder %s3582_s27, %s3720_s29 }
 0x982   : > { %p2866_p12 = scmp.lt.s32.totalorder %s2864_s24, %s2860_s9 }
 0x983   : > { %p2862_p6 = pnand %p2861_p1, %p3721_p5 }
 0x984   : > { %p2867_p10 = por %p2866_p12, %p2865_p11 }
 0x985   : > { %p2863_p8 = pneg %p2862_p6 }
 0x987   : > { %p2868_p4 = pnand %p2867_p10, %p2863_p8 }
 0x989   : > { %2871 = shalt.err (!%p2868_p4)
}
 0x98a   : > { %s2951_s0 = smov 128  }
 0x98b   : > { %2505 = dma.vmem_to_hbm [thread:$0]  (%p3721_p5), %s3584_s20, 256, %s3582_s27, %s2008_s14, %s2951_s0, %s2951_s0, %s2947_s26  }
 0x98c PF: > { %s3722_s11 = sld [smem:[#allocation24_spill]]  ;;  %p3725_p7 = scmp.ge.s32.totalorder %s2930_s21, 2 }
 0x98d   : > { %s3723_s16 = sld [smem:[#allocation26_spill]] }
 0x992   : > { %s2036_s12 = sand.u32 1, %s3722_s11  }
 0x993   : > { %p3724_p3 = scmp.ne.s32.totalorder %s3723_s16, 0  ;;  %s2037_s18 = scalar_lea.sflag [#allocation4], %s2036_s12 }
 0x995   : > { %p2534_p2 = pnand %p3725_p7, %p3724_p3 }
 0x997   : > { %p2535_p13 = pneg %p2534_p2 }
 0x999   : > { %2913 = dma.done.wait (%p2535_p13), %s2037_s18, 256  }
 0x99a   : > { %2915 = vsyncadd (%p2535_p13), %s2037_s18, 4294967040  ;;  %s3726_s21 = sld [smem:[#allocation27_spill]]  ;;  %s3729_s18 = smov %s2922_s19 }
 0x99b   : > { %s3727_s7 = sld [smem:[#allocation25_spill]] }
 0x99c   : > { %s3728_s20 = sld [smem:[#allocation29_spill]] }
 0x9a0   : > { %p36_p0 = scmp.ge.s32.totalorder %s3726_s21, 4  }
 0x9a1   : > { %s3730_s19 = smov %s3727_s7 }
 0x9a2   :  { %38 = sbr.rel (!%p36_p0) target bundleno = 22 (0x16), region = 181 }
 0x9a7   :  { %2042 = vsyncpa [#allocation3], 1 }
 0x9a8   :  { %2044 = vsyncpa [#allocation3 + $0x1], 1 }
 0x9a9   :  { %2045 = vsyncpa [#allocation6], 1 }
 0x9aa   :  { %2047 = vsyncpa [#allocation6 + $0x1], 1 }
 0x9ab   :  { %2048 = vsyncpa [#allocation9], 1 }
 0x9ac   :  { %2050 = vsyncpa [#allocation9 + $0x1], 1 }
 0x9ad   :  { %2051 = vsyncpa [#allocation12], 1 }
 0x9ae   :  { %2052 = vsyncpa [#allocation15], 1 }
 0x9af   :  { %2053 = vsyncpa [#allocation4], 1 }
 0x9b0   :  { %2055 = vsyncpa [#allocation4 + $0x1], 1 }

</bundles_post_ra>
